<compile_context>
chip_gen: v5e
topology: v5e:2x2
jax: 0.10.0
libtpu: 0.0.40
codegen_flags: <defaults>
</compile_context>

<pallas_src>
import functools

import jax
import jax.numpy as jnp
from jax.experimental import pallas as pl
from jax.experimental.pallas import tpu as pltpu

LANE = 128  # TPU lane width


def _round_up(n, m):
    return ((n + m - 1) // m) * m


def _cdiv(a, b):
    return -(-a // b)


def _pad_to(a, shape):
    return jnp.pad(a, [(0, s - d) for d, s in zip(a.shape, shape)])


def mlp_kernel(x_ref, w1_ref, b1_ref, w2_ref, b2_ref, w3_ref, b3_ref, o_ref):
    # x arrives as f32 (single HBM pass); cast to bf16 in VMEM for the MXU.
    x = x_ref[...].astype(jnp.bfloat16)
    # fc1 + relu (bf16 matmul, f32 accumulate / bias-add / relu)
    h1 = jnp.dot(x, w1_ref[...], preferred_element_type=jnp.float32)
    h1 = jnp.maximum(h1 + b1_ref[...], 0.0).astype(jnp.bfloat16)
    # fc2 + relu
    h2 = jnp.dot(h1, w2_ref[...], preferred_element_type=jnp.float32)
    h2 = jnp.maximum(h2 + b2_ref[...], 0.0).astype(jnp.bfloat16)
    # fc3 (no activation); lane-dense (padded-to-128) bf16 store
    out = jnp.dot(h2, w3_ref[...], preferred_element_type=jnp.float32)
    o_ref[...] = (out + b3_ref[...]).astype(o_ref.dtype)


def prepare_params(params):
    """Zero-pad + cast the logical (PyTorch-equivalent) params for the kernel.

    Returns ((w1,b1,w2,b2,w3,b3) padded, logical_out_dim).
    Weights -> bf16, biases -> f32 (added on the f32 accumulator).
    """
    w1, b1, w2, b2, w3, b3 = params
    in_dim = w1.shape[0]
    h1, h2 = w1.shape[1], w2.shape[1]
    out_dim = w3.shape[1]
    h1p = _round_up(h1, LANE)            # 500 -> 512
    h2p = _round_up(h2, LANE)            # 256 -> 256
    outp = _round_up(out_dim, LANE)      # 10  -> 128 (minimum lane-dense width)

    w1p = _pad_to(w1, (in_dim, h1p)).astype(jnp.bfloat16)
    b1p = _pad_to(b1, (1, h1p)).astype(jnp.float32)
    w2p = _pad_to(w2, (h1p, h2p)).astype(jnp.bfloat16)
    b2p = _pad_to(b2, (1, h2p)).astype(jnp.float32)
    w3p = _pad_to(w3, (h2p, outp)).astype(jnp.bfloat16)
    b3p = _pad_to(b3, (1, outp)).astype(jnp.float32)
    return (w1p, b1p, w2p, b2p, w3p, b3p), out_dim


@functools.partial(jax.jit, static_argnames=("out_dim", "tb"))
def mlp_forward(x, kernel_params, *, out_dim, tb=1024):
    """x: (..., input_dim) or (B,1,28,28)-style; flattened to (B, input_dim)."""
    w1, b1, w2, b2, w3, b3 = kernel_params
    input_dim = w1.shape[0]
    out_pad = w3.shape[1]

    x2d = x.reshape(-1, input_dim).astype(jnp.float32)   # mirrors x.view(-1, 784)
    B = x2d.shape[0]

    # Batch tile: multiple of 16 (bf16 sublane packing), capped at ~cdiv(B,2)
    # so the grid has >= 2 steps whenever B > 16 (v7x megacore + DMA overlap).
    TB = max(16, _round_up(min(tb, _cdiv(B, 2)), 16))
    grid = (_cdiv(B, TB),)   # ragged last tile: OOB reads are garbage rows whose
                             # outputs land on dropped OOB stores -> no jnp.pad.

    flops = 2 * B * (input_dim * w1.shape[1]
                     + w1.shape[1] * w2.shape[1]
                     + w2.shape[1] * out_pad)
    weight_bytes = sum(int(a.size) * a.dtype.itemsize
                       for a in (w1, b1, w2, b2, w3, b3))
    bytes_accessed = B * input_dim * 4 + weight_bytes + B * out_pad * 2

    # Triple-buffer the activation stream only when the grid is deep enough.
    if grid[0] >= 3:
        x_spec = pl.BlockSpec((TB, input_dim), lambda i: (i, 0),
                              pipeline_mode=pl.Buffered(3))
    else:
        x_spec = pl.BlockSpec((TB, input_dim), lambda i: (i, 0))

    out = pl.pallas_call(
        mlp_kernel,
        out_shape=jax.ShapeDtypeStruct((B, out_pad), jnp.bfloat16),
        grid_spec=pltpu.PrefetchScalarGridSpec(
            num_scalar_prefetch=0,
            grid=grid,
            in_specs=[
                # activations: f32, tiled over batch (pipelined DMA)
                x_spec,
                # weights / biases: same block every step -> resident in VMEM
                pl.BlockSpec(w1.shape, lambda i: (0, 0)),
                pl.BlockSpec(b1.shape, lambda i: (0, 0)),
                pl.BlockSpec(w2.shape, lambda i: (0, 0)),
                pl.BlockSpec(b2.shape, lambda i: (0, 0)),
                pl.BlockSpec(w3.shape, lambda i: (0, 0)),
                pl.BlockSpec(b3.shape, lambda i: (0, 0)),
            ],
            out_specs=pl.BlockSpec((TB, out_pad), lambda i: (i, 0)),
        ),
        compiler_params=pltpu.CompilerParams(
            # batch tiles are independent -> shard across TCs on v7x megacore
            dimension_semantics=("parallel",),
            # TB=1024 f32 x (multi-buffered) + resident weights + temporaries
            # ~= 20 MiB; v5e's default scoped limit is 16 MiB, so be explicit.
            vmem_limit_bytes=40 * 1024 * 1024,
        ),
        cost_estimate=pl.CostEstimate(
            flops=flops, transcendentals=0, bytes_accessed=bytes_accessed),
    )(x2d, w1, b1, w2, b2, w3, b3)

    # Drop lane padding; logits back to f32 on the tiny (B, out_dim) slice.
    return out[:, :out_dim].astype(jnp.float32)


def init_params(key, input_dim=784, output_dim=10):
    """Deterministic init mimicking PyTorch's default Linear init
    (uniform(-1/sqrt(fan_in), 1/sqrt(fan_in))). Logical (unpadded, f32)."""
    dims = [(input_dim, 500), (500, 256), (256, output_dim)]
    params = []
    for fan_in, fan_out in dims:
        key, kw, kb = jax.random.split(key, 3)
        bound = 1.0 / jnp.sqrt(fan_in)
        w = jax.random.uniform(kw, (fan_in, fan_out), jnp.float32, -bound, bound)
        b = jax.random.uniform(kb, (1, fan_out), jnp.float32, -bound, bound)
        params += [w, b]
    return tuple(params)


def reference_forward(x, params):
    w1, b1, w2, b2, w3, b3 = params
    x2d = x.reshape(-1, w1.shape[0])
    h1 = jnp.maximum(x2d @ w1 + b1, 0.0)
    h2 = jnp.maximum(h1 @ w2 + b2, 0.0)
    return h2 @ w3 + b3


if __name__ == "__main__":
    key = jax.random.PRNGKey(0)
    kp, kx1, kx2 = jax.random.split(key, 3)

    input_dim, output_dim = 784, 10
    params = init_params(kp, input_dim, output_dim)
    kernel_params, out_dim = prepare_params(params)

    # Small MNIST-style batch (flattened by view(-1, 784)); single-tile grid.
    x = jax.random.normal(kx1, (2, 1, 28, 28), jnp.float32)
    out = jax.block_until_ready(mlp_forward(x, kernel_params, out_dim=out_dim))
    assert out.shape == (2, output_dim), out.shape
    ref = reference_forward(x, params)
    # bf16 matmuls with f32 accumulation + bf16 output store -> loose tolerance.
    assert jnp.allclose(out, ref, atol=5e-2, rtol=5e-2), (
        float(jnp.max(jnp.abs(out - ref))))

    # Larger, non-tile-divisible batch: exercises the multi-tile grid,
    # Buffered(3) activation pipeline and the ragged (no-pad) last tile.
    x2 = jax.random.normal(kx2, (300, input_dim), jnp.float32)
    out2 = jax.block_until_ready(
        mlp_forward(x2, kernel_params, out_dim=out_dim, tb=128))
    ref2 = reference_forward(x2, params)
    assert out2.shape == (300, output_dim), out2.shape
    assert jnp.allclose(out2, ref2, atol=5e-2, rtol=5e-2), (
        float(jnp.max(jnp.abs(out2 - ref2))))

    print("KERNEL_OK")
</pallas_src>

<mosaic_0001>
module attributes {stable_mosaic.version = 11 : i64} {
  func.func @mlp_kernel(%arg0: i32, %arg1: memref<16x784xf32, #tpu.memory_space<vmem>>, %arg2: memref<784x512xbf16, #tpu.memory_space<vmem>>, %arg3: memref<1x512xf32, #tpu.memory_space<vmem>>, %arg4: memref<512x256xbf16, #tpu.memory_space<vmem>>, %arg5: memref<1x256xf32, #tpu.memory_space<vmem>>, %arg6: memref<256x128xbf16, #tpu.memory_space<vmem>>, %arg7: memref<1x128xf32, #tpu.memory_space<vmem>>, %arg8: memref<16x128xbf16, #tpu.memory_space<vmem>>) attributes {dimension_semantics = [#tpu.dimension_semantics<parallel>], iteration_bounds = array<i64: 1>, scalar_prefetch = 0 : i64, scratch_operands = 0 : i64, tpu.core_type = #tpu.core_type<tc>, window_params = [{transform_indices = @transform_0, window_bounds = array<i64: 16, 784>}, {pipeline_mode = #tpu.pipeline_mode<synchronous>, transform_indices = @transform_1, window_bounds = array<i64: 784, 512>}, {pipeline_mode = #tpu.pipeline_mode<synchronous>, transform_indices = @transform_2, window_bounds = array<i64: 1, 512>}, {pipeline_mode = #tpu.pipeline_mode<synchronous>, transform_indices = @transform_3, window_bounds = array<i64: 512, 256>}, {pipeline_mode = #tpu.pipeline_mode<synchronous>, transform_indices = @transform_4, window_bounds = array<i64: 1, 256>}, {pipeline_mode = #tpu.pipeline_mode<synchronous>, transform_indices = @transform_5, window_bounds = array<i64: 256, 128>}, {pipeline_mode = #tpu.pipeline_mode<synchronous>, transform_indices = @transform_6, window_bounds = array<i64: 1, 128>}, {transform_indices = @transform_7, window_bounds = array<i64: 16, 128>}]} {
    %c0 = arith.constant 0 : index
    %c0_0 = arith.constant 0 : index
    %0 = vector.load %arg1[%c0, %c0_0] : memref<16x784xf32, #tpu.memory_space<vmem>>, vector<16x784xf32>
    %1 = arith.truncf %0 : vector<16x784xf32> to vector<16x784xbf16>
    %c0_1 = arith.constant 0 : index
    %c0_2 = arith.constant 0 : index
    %2 = vector.load %arg2[%c0_1, %c0_2] : memref<784x512xbf16, #tpu.memory_space<vmem>>, vector<784x512xbf16>
    %cst = arith.constant dense<0.000000e+00> : vector<16x512xf32>
    %3 = tpu.matmul %1, %2, %cst {dimension_numbers = #tpu.dot_dimension_numbers<[1], [0], [0], [1], [0, 0, 1, 1], [], []>} : vector<16x784xbf16>, vector<784x512xbf16>, vector<16x512xf32> -> vector<16x512xf32>
    %c0_3 = arith.constant 0 : index
    %c0_4 = arith.constant 0 : index
    %4 = vector.load %arg3[%c0_3, %c0_4] : memref<1x512xf32, #tpu.memory_space<vmem>>, vector<1x512xf32>
    %5 = vector.broadcast %4 : vector<1x512xf32> to vector<16x512xf32>
    %6 = arith.addf %3, %5 : vector<16x512xf32>
    %cst_5 = arith.constant 0.000000e+00 : f32
    %7 = vector.broadcast %cst_5 : f32 to vector<16x512xf32>
    %8 = arith.maximumf %6, %7 : vector<16x512xf32>
    %9 = arith.truncf %8 : vector<16x512xf32> to vector<16x512xbf16>
    %c0_6 = arith.constant 0 : index
    %c0_7 = arith.constant 0 : index
    %10 = vector.load %arg4[%c0_6, %c0_7] : memref<512x256xbf16, #tpu.memory_space<vmem>>, vector<512x256xbf16>
    %cst_8 = arith.constant dense<0.000000e+00> : vector<16x256xf32>
    %11 = tpu.matmul %9, %10, %cst_8 {dimension_numbers = #tpu.dot_dimension_numbers<[1], [0], [0], [1], [0, 0, 1, 1], [], []>} : vector<16x512xbf16>, vector<512x256xbf16>, vector<16x256xf32> -> vector<16x256xf32>
    %c0_9 = arith.constant 0 : index
    %c0_10 = arith.constant 0 : index
    %12 = vector.load %arg5[%c0_9, %c0_10] : memref<1x256xf32, #tpu.memory_space<vmem>>, vector<1x256xf32>
    %13 = vector.broadcast %12 : vector<1x256xf32> to vector<16x256xf32>
    %14 = arith.addf %11, %13 : vector<16x256xf32>
    %cst_11 = arith.constant 0.000000e+00 : f32
    %15 = vector.broadcast %cst_11 : f32 to vector<16x256xf32>
    %16 = arith.maximumf %14, %15 : vector<16x256xf32>
    %17 = arith.truncf %16 : vector<16x256xf32> to vector<16x256xbf16>
    %c0_12 = arith.constant 0 : index
    %c0_13 = arith.constant 0 : index
    %18 = vector.load %arg6[%c0_12, %c0_13] : memref<256x128xbf16, #tpu.memory_space<vmem>>, vector<256x128xbf16>
    %cst_14 = arith.constant dense<0.000000e+00> : vector<16x128xf32>
    %19 = tpu.matmul %17, %18, %cst_14 {dimension_numbers = #tpu.dot_dimension_numbers<[1], [0], [0], [1], [0, 0, 1, 1], [], []>} : vector<16x256xbf16>, vector<256x128xbf16>, vector<16x128xf32> -> vector<16x128xf32>
    %c0_15 = arith.constant 0 : index
    %c0_16 = arith.constant 0 : index
    %20 = vector.load %arg7[%c0_15, %c0_16] : memref<1x128xf32, #tpu.memory_space<vmem>>, vector<1x128xf32>
    %21 = vector.broadcast %20 : vector<1x128xf32> to vector<16x128xf32>
    %22 = arith.addf %19, %21 : vector<16x128xf32>
    %23 = arith.truncf %22 : vector<16x128xf32> to vector<16x128xbf16>
    %c0_17 = arith.constant 0 : index
    %c0_18 = arith.constant 0 : index
    %24 = vector.load %arg8[%c0_17, %c0_18] : memref<16x128xbf16, #tpu.memory_space<vmem>>, vector<16x128xbf16>
    tpu.vector_store %arg8[%c0_17, %c0_18], %23 {strides = array<i32>} : memref<16x128xbf16, #tpu.memory_space<vmem>>, vector<16x128xbf16>,
    return
  }
  func.func @transform_0(%arg0: i32) -> (i32, i32) {
    %c0_i32 = arith.constant 0 : i32
    %c0_i32_0 = arith.constant 0 : i32
    return %arg0, %c0_i32 : i32, i32
  }
  func.func @transform_1(%arg0: i32) -> (i32, i32) {
    %c0_i32 = arith.constant 0 : i32
    %c0_i32_0 = arith.constant 0 : i32
    %c0_i32_1 = arith.constant 0 : i32
    return %c0_i32, %c0_i32_0 : i32, i32
  }
  func.func @transform_2(%arg0: i32) -> (i32, i32) {
    %c0_i32 = arith.constant 0 : i32
    %c0_i32_0 = arith.constant 0 : i32
    %c0_i32_1 = arith.constant 0 : i32
    return %c0_i32, %c0_i32_0 : i32, i32
  }
  func.func @transform_3(%arg0: i32) -> (i32, i32) {
    %c0_i32 = arith.constant 0 : i32
    %c0_i32_0 = arith.constant 0 : i32
    %c0_i32_1 = arith.constant 0 : i32
    return %c0_i32, %c0_i32_0 : i32, i32
  }
  func.func @transform_4(%arg0: i32) -> (i32, i32) {
    %c0_i32 = arith.constant 0 : i32
    %c0_i32_0 = arith.constant 0 : i32
    %c0_i32_1 = arith.constant 0 : i32
    return %c0_i32, %c0_i32_0 : i32, i32
  }
  func.func @transform_5(%arg0: i32) -> (i32, i32) {
    %c0_i32 = arith.constant 0 : i32
    %c0_i32_0 = arith.constant 0 : i32
    %c0_i32_1 = arith.constant 0 : i32
    return %c0_i32, %c0_i32_0 : i32, i32
  }
  func.func @transform_6(%arg0: i32) -> (i32, i32) {
    %c0_i32 = arith.constant 0 : i32
    %c0_i32_0 = arith.constant 0 : i32
    %c0_i32_1 = arith.constant 0 : i32
    return %c0_i32, %c0_i32_0 : i32, i32
  }
  func.func @transform_7(%arg0: i32) -> (i32, i32) {
    %c0_i32 = arith.constant 0 : i32
    %c0_i32_0 = arith.constant 0 : i32
    return %arg0, %c0_i32 : i32, i32
  }
}

</mosaic_0001>

<bundles_post_ra>
// kernel: mlp_forward.1
= control target key start
LH: loop header
LB: loop body
LE: loop exit
PB: predicated region body
PF: predicated region fallthrough
CT: control target
= control target key end

     0   :  { %12 = vsyncpa [#allocation3], 0  ;;  %s4169_s0 = inlined_call_operand.vmem [shape: f32[2,784], index: 0, kind: input, shape index: {}]   ;;  %s4170_s1 = inlined_call_operand.hbm [shape: bf16[784,512], index: 1, kind: input, shape index: {}]   ;;  %s4171_s2 = inlined_call_operand.vmem [shape: f32[1,512], index: 2, kind: input, shape index: {}]   ;;  %s4172_s3 = inlined_call_operand.hbm [shape: bf16[512,256], index: 3, kind: input, shape index: {}]   ;;  %s4173_s4 = inlined_call_operand.vmem [shape: f32[1,256], index: 4, kind: input, shape index: {}]   ;;  %s4174_s5 = inlined_call_operand.vmem [shape: bf16[256,128], index: 5, kind: input, shape index: {}]   ;;  %s4175_s6 = inlined_call_operand.vmem [shape: f32[1,128], index: 6, kind: input, shape index: {}]   ;;  %s4176_s7 = inlined_call_operand.vmem [shape: bf16[2,128], index: 7, kind: output, shape index: {}]  }
   0x1   :  { %s20_s26 = sshll.u32 %s4170_s1, 4  ;;  %s21_s26 = int_to_ptr.hbm [resolvable:$true] %s20_s26 }
   0x2   :  { %13 = vsyncpa [#allocation5], 0  ;;  %s3947_s27 = smov [#allocation2]   ;;  %s35_s8 = sshll.u32 %s4172_s3, 4  ;;  %s36_s8 = int_to_ptr.hbm [resolvable:$true] %s35_s8 }
   0x3   :  { %s22_s28 = sshll.u32 %s3947_s27, 4  ;;  %s3948_s9 = smov 256   ;;  %s23_s28 = int_to_ptr.vmem [resolvable:$true] %s22_s28 }
   0x4   :  { %s3949_s10 = smov 16   ;;  %s3950_s11 = smov [#allocation4]  }
   0x5   :  { %28 = dma.hbm_to_vmem [thread:$0]  %s21_s26, 25088, %s23_s28, [#allocation3], %s3948_s9, %s3948_s9, %s3949_s10  }
   0x6   :  { %s37_s12 = sshll.u32 %s3950_s11, 4  ;;  %s3951_s13 = smov 128   ;;  %s38_s12 = int_to_ptr.vmem [resolvable:$true] %s37_s12 }
   0x7   :  { %s3952_s14 = smov 8  }
   0x8   :  { %43 = dma.hbm_to_vmem [thread:$0]  %s36_s8, 8192, %s38_s12, [#allocation5], %s3951_s13, %s3951_s13, %s3952_s14  }
   0x9   :  { %3943 = dma.done.wait [#allocation3], 25088  }
   0xa   :  { %3944 = vsyncadd [#allocation3], 4294942208 }
   0xb   :  { %3945 = dma.done.wait [#allocation5], 8192  }
   0xc   :  { %3946 = vsyncadd [#allocation5], 4294959104  ;;  %v2618_v0 = vld [vmem:[#allocation2 + $0xe0] sm:$0xf]  ;;  %v3642_v1 = vld [vmem:[#allocation2 + $0xec] sm:$0xf0] }
   0xd   :  { %v2746_v2 = vld [vmem:[#allocation2 + $0x1e0] sm:$0xf]  ;;  %v2619_v3 = vor.u32 %v3642_v1, %v2618_v0  ;;  %v3674_v4 = vld [vmem:[#allocation2 + $0x1ec] sm:$0xf0]  ;;  %vm1335_vm0 = vcmask 130048   ;;  %vm2417_vm1 = vcmask 1040384  }
   0xe   :  { %v2874_v5 = vld [vmem:[#allocation2 + $0x2e0] sm:$0xf]  ;;  %v3706_v6 = vld [vmem:[#allocation2 + $0x2ec] sm:$0xf0]  ;;  %v2747_v7 = vor.u32 %v3674_v4, %v2746_v2 }
   0xf   :  { %v2875_v8 = vor.u32 %v3706_v6, %v2874_v5  ;;  %v3002_v9 = vld [vmem:[#allocation2 + $0x3e0] sm:$0xf]  ;;  %v3738_v10 = vld [vmem:[#allocation2 + $0x3ec] sm:$0xf0]  ;;  %1339 = vmatpush.bf16.msra.mxu0 %v2619_v3 }
  0x10   :  { %v2602_v11 = vld [vmem:[#allocation2 + $0xc0] sm:$0xf]  ;;  %v3003_v12 = vor.u32 %v3738_v10, %v3002_v9  ;;  %v3638_v13 = vld [vmem:[#allocation2 + $0xcc] sm:$0xf0]  ;;  %1353 = vmatpush.bf16.msra.mxu1 %v2747_v7 }
  0x11   :  { %v2730_v14 = vld [vmem:[#allocation2 + $0x1c0] sm:$0xf]  ;;  %v3670_v15 = vld [vmem:[#allocation2 + $0x1cc] sm:$0xf0]  ;;  %1367 = vmatpush.bf16.msra.mxu2 %v2875_v8  ;;  %v2603_v16 = vor.u32 %v3638_v13, %v2602_v11 }
  0x12   :  { %v2731_v17 = vor.u32 %v3670_v15, %v2730_v14  ;;  %v2858_v18 = vld [vmem:[#allocation2 + $0x2c0] sm:$0xf]  ;;  %v3702_v19 = vld [vmem:[#allocation2 + $0x2cc] sm:$0xf0]  ;;  %1381 = vmatpush.bf16.msra.mxu3 %v3003_v12 }
  0x13   :  { %v2986_v20 = vld [vmem:[#allocation2 + $0x3c0] sm:$0xf]  ;;  %v2859_v21 = vor.u32 %v3702_v19, %v2858_v18  ;;  %v3734_v22 = vld [vmem:[#allocation2 + $0x3cc] sm:$0xf0]  ;;  %1340 = vmatpush.bf16.msra.mxu0 %v2603_v16 }
  0x14   :  { %v2586_v23 = vld [vmem:[#allocation2 + $0xa0] sm:$0xf]  ;;  %v3634_v24 = vld [vmem:[#allocation2 + $0xac] sm:$0xf0]  ;;  %v2987_v25 = vor.u32 %v3734_v22, %v2986_v20  ;;  %1354 = vmatpush.bf16.msra.mxu1 %v2731_v17 }
  0x15   :  { %v2714_v26 = vld [vmem:[#allocation2 + $0x1a0] sm:$0xf]  ;;  %v3666_v27 = vld [vmem:[#allocation2 + $0x1ac] sm:$0xf0]  ;;  %v2587_v29 = vor.u32 %v3634_v24, %v2586_v23  ;;  %1368 = vmatpush.bf16.msra.mxu2 %v2859_v21  ;;  %v59_v23 = vld [vmem:[%s4169_s0] sm:$0xff] }
  0x16   :  { %v2842_v28 = vld [vmem:[#allocation2 + $0x2a0] sm:$0xf]  ;;  %v3698_v30 = vld [vmem:[#allocation2 + $0x2ac] sm:$0xf0]  ;;  %v2715_v33 = vor.u32 %v3666_v27, %v2714_v26  ;;  %1382 = vmatpush.bf16.msra.mxu3 %v2987_v25  ;;  %v61_v24 = vld [vmem:[%s4169_s0 + $0xe] sm:$0xff] }
  0x17   :  { %v2970_v31 = vld [vmem:[#allocation2 + $0x3a0] sm:$0xf]  ;;  %v3730_v32 = vld [vmem:[#allocation2 + $0x3ac] sm:$0xf0]  ;;  %v2843_v34 = vor.u32 %v3698_v30, %v2842_v28  ;;  %1341 = vmatpush.bf16.msra.mxu0 %v2587_v29  ;;  %v63_v29 = vld [vmem:[%s4169_s0 + $0x1c] sm:$0xff] }
  0x18   :  { %v2570_v35 = vld [vmem:[#allocation2 + $0x80] sm:$0xf]  ;;  %v3630_v36 = vld [vmem:[#allocation2 + $0x8c] sm:$0xf0]  ;;  %v2971_v38 = vor.u32 %v3730_v32, %v2970_v31  ;;  %1355 = vmatpush.bf16.msra.mxu1 %v2715_v33  ;;  %91 = vst [vmem:[#allocation1] ss:$4 sm:$0xff] %v59_v23 }
  0x19   :  { %v2698_v37 = vld [vmem:[#allocation2 + $0x180] sm:$0xf]  ;;  %v3662_v39 = vld [vmem:[#allocation2 + $0x18c] sm:$0xf0]  ;;  %v2571_v44 = vor.u32 %v3630_v36, %v2570_v35  ;;  %1369 = vmatpush.bf16.msra.mxu2 %v2843_v34  ;;  %93 = vst [vmem:[#allocation1 + $0x1] ss:$4 sm:$0xff] %v61_v24 }
  0x1a   :  { %v2826_v40 = vld [vmem:[#allocation2 + $0x280] sm:$0xf]  ;;  %v3694_v41 = vld [vmem:[#allocation2 + $0x28c] sm:$0xf0]  ;;  %v2699_v45 = vor.u32 %v3662_v39, %v2698_v37  ;;  %1383 = vmatpush.bf16.msra.mxu3 %v2971_v38  ;;  %95 = vst [vmem:[#allocation1 + $0x2] ss:$4 sm:$0xff] %v63_v29 }
  0x1b   :  { %v2954_v42 = vld [vmem:[#allocation2 + $0x380] sm:$0xf]  ;;  %v3726_v43 = vld [vmem:[#allocation2 + $0x38c] sm:$0xf0]  ;;  %v2827_v46 = vor.u32 %v3694_v41, %v2826_v40  ;;  %1342 = vmatpush.bf16.msra.mxu0 %v2571_v44  ;;  %v3640_v37 = vld [vmem:[#allocation2 + $0xe4] sm:$0xf] }
  0x1c   :  { %v2554_v47 = vld [vmem:[#allocation2 + $0x60] sm:$0xf]  ;;  %v3626_v48 = vld [vmem:[#allocation2 + $0x6c] sm:$0xf0]  ;;  %v2955_v50 = vor.u32 %v3726_v43, %v2954_v42  ;;  %1356 = vmatpush.bf16.msra.mxu1 %v2699_v45  ;;  %v2620_v38 = vld [vmem:[#allocation2 + $0xf0] sm:$0xf0] }
  0x1d   :  { %v2682_v49 = vld [vmem:[#allocation2 + $0x160] sm:$0xf]  ;;  %v3658_v51 = vld [vmem:[#allocation2 + $0x16c] sm:$0xf0]  ;;  %v2555_v56 = vor.u32 %v3626_v48, %v2554_v47  ;;  %1370 = vmatpush.bf16.msra.mxu2 %v2827_v46  ;;  %v2623_v46 = vor.u32 %v3640_v37, %v2620_v38  ;;  %v3668_v24 = vld [vmem:[#allocation2 + $0x1c4] sm:$0xf] }
  0x1e   :  { %v2810_v52 = vld [vmem:[#allocation2 + $0x260] sm:$0xf]  ;;  %v3690_v53 = vld [vmem:[#allocation2 + $0x26c] sm:$0xf0]  ;;  %v2683_v57 = vor.u32 %v3658_v51, %v2682_v49  ;;  %1384 = vmatpush.bf16.msra.mxu3 %v2955_v50 }
  0x1f   :  { %v2938_v54 = vld [vmem:[#allocation2 + $0x360] sm:$0xf]  ;;  %v3722_v55 = vld [vmem:[#allocation2 + $0x36c] sm:$0xf0]  ;;  %v2811_v58 = vor.u32 %v3690_v53, %v2810_v52  ;;  %1343 = vmatpush.bf16.msra.mxu0 %v2555_v56  ;;  %v3636_v53 = vld [vmem:[#allocation2 + $0xc4] sm:$0xf] }
  0x20   :  { %v2538_v59 = vld [vmem:[#allocation2 + $0x40] sm:$0xf]  ;;  %v3622_v60 = vld [vmem:[#allocation2 + $0x4c] sm:$0xf0]  ;;  %v2939_v62 = vor.u32 %v3722_v55, %v2938_v54  ;;  %1357 = vmatpush.bf16.msra.mxu1 %v2683_v57  ;;  %v2604_v54 = vld [vmem:[#allocation2 + $0xd0] sm:$0xf0] }
  0x21   :  { %v2666_v61 = vld [vmem:[#allocation2 + $0x140] sm:$0xf]  ;;  %v3654_v63 = vld [vmem:[#allocation2 + $0x14c] sm:$0xf0]  ;;  %v2539_v4 = vor.u32 %v3622_v60, %v2538_v59  ;;  %1371 = vmatpush.bf16.msra.mxu2 %v2811_v58 }
  0x22   :  { %v2794_v0 = vld [vmem:[#allocation2 + $0x240] sm:$0xf]  ;;  %v3686_v1 = vld [vmem:[#allocation2 + $0x24c] sm:$0xf0]  ;;  %v2667_v6 = vor.u32 %v3654_v63, %v2666_v61  ;;  %1385 = vmatpush.bf16.msra.mxu3 %v2939_v62  ;;  %v3632_v62 = vld [vmem:[#allocation2 + $0xa4] sm:$0xf] }
  0x23   :  { %v2922_v2 = vld [vmem:[#allocation2 + $0x340] sm:$0xf]  ;;  %v3718_v3 = vld [vmem:[#allocation2 + $0x34c] sm:$0xf0]  ;;  %v2795_v7 = vor.u32 %v3686_v1, %v2794_v0  ;;  %1344 = vmatpush.bf16.msra.mxu0 %v2539_v4  ;;  %v2588_v63 = vld [vmem:[#allocation2 + $0xb0] sm:$0xf0] }
  0x24   :  { %v2522_v5 = vld [vmem:[#allocation2 + $0x20] sm:$0xf]  ;;  %v3618_v8 = vld [vmem:[#allocation2 + $0x2c] sm:$0xf0]  ;;  %v2923_v11 = vor.u32 %v3718_v3, %v2922_v2  ;;  %1358 = vmatpush.bf16.msra.mxu1 %v2667_v6  ;;  %v2607_v3 = vor.u32 %v3636_v53, %v2604_v54  ;;  %v66_v53 = vld [vmem:[%s4169_s0 + $0x32] sm:$0x3f] }
  0x25   :  { %v2650_v9 = vld [vmem:[#allocation2 + $0x120] sm:$0xf]  ;;  %v3650_v10 = vld [vmem:[#allocation2 + $0x12c] sm:$0xf0]  ;;  %v2523_v18 = vor.u32 %v3618_v8, %v2522_v5  ;;  %1372 = vmatpush.bf16.msra.mxu2 %v2795_v7  ;;  %105 = vst [vmem:[#allocation1 + $0x23] ss:$4 sm:$0xff] %v66_v53 }
  0x26   :  { %v2778_v12 = vld [vmem:[#allocation2 + $0x220] sm:$0xf]  ;;  %v3682_v13 = vld [vmem:[#allocation2 + $0x22c] sm:$0xf0]  ;;  %v2651_v25 = vor.u32 %v3650_v10, %v2650_v9  ;;  %1386 = vmatpush.bf16.msra.mxu3 %v2923_v11  ;;  %v2591_v11 = vor.u32 %v3632_v62, %v2588_v63  ;;  %v2524_v62 = vld [vmem:[#allocation2 + $0x30] sm:$0xf0] }
  0x27   :  { %v2906_v14 = vld [vmem:[#allocation2 + $0x320] sm:$0xf]  ;;  %v3714_v15 = vld [vmem:[#allocation2 + $0x32c] sm:$0xf0]  ;;  %v2779_v26 = vor.u32 %v3682_v13, %v2778_v12  ;;  %1345 = vmatpush.bf16.msra.mxu0 %v2523_v18  ;;  %v3728_v53 = vld [vmem:[#allocation2 + $0x3a4] sm:$0xf] }
  0x28   :  { %v2506_v16 = vld [vmem:[#allocation2] sm:$0xf]  ;;  %v3614_v17 = vld [vmem:[#allocation2 + $0xc] sm:$0xf0]  ;;  %v2907_v31 = vor.u32 %v3714_v15, %v2906_v14  ;;  %1359 = vmatpush.bf16.msra.mxu1 %v2651_v25  ;;  %v3628_v14 = vld [vmem:[#allocation2 + $0x84] sm:$0xf] }
  0x29   :  { %v2634_v19 = vld [vmem:[#allocation2 + $0x100] sm:$0xf]  ;;  %v3646_v20 = vld [vmem:[#allocation2 + $0x10c] sm:$0xf0]  ;;  %v2507_v36 = vor.u32 %v3614_v17, %v2506_v16  ;;  %1373 = vmatpush.bf16.msra.mxu2 %v2779_v26  ;;  %v2572_v15 = vld [vmem:[#allocation2 + $0x90] sm:$0xf0] }
  0x2a   :  { %v2762_v21 = vld [vmem:[#allocation2 + $0x200] sm:$0xf]  ;;  %v3678_v22 = vld [vmem:[#allocation2 + $0x20c] sm:$0xf0]  ;;  %v2635_v39 = vor.u32 %v3646_v20, %v2634_v19  ;;  %1387 = vmatpush.bf16.msra.mxu3 %v2907_v31  ;;  %v2575_v18 = vor.u32 %v3628_v14, %v2572_v15  ;;  %v3672_v19 = vld [vmem:[#allocation2 + $0x1e4] sm:$0xf] }
  0x2b   :  { %v2890_v27 = vld [vmem:[#allocation2 + $0x300] sm:$0xf]  ;;  %v3710_v28 = vld [vmem:[#allocation2 + $0x30c] sm:$0xf0]  ;;  %v2763_v40 = vor.u32 %v3678_v22, %v2762_v21  ;;  %1346 = vmatpush.bf16.msra.mxu0 %v2507_v36  ;;  %v2748_v20 = vld [vmem:[#allocation2 + $0x1f0] sm:$0xf0] }
  0x2c   :  { %v65_v30 = vld [vmem:[%s4169_s0 + $0x2a] sm:$0xff]  ;;  %v3770_v33 = vld [vmem:[#allocation2 + $0x4ec] sm:$0xf0]  ;;  %v2891_v43 = vor.u32 %v3710_v28, %v2890_v27  ;;  %1360 = vmatpush.bf16.msra.mxu1 %v2635_v39  ;;  %v73_v6 = vld [vmem:[%s4169_s0 + $0x62] sm:$0xff] }
  0x2d   :  { %v3130_v32 = vld [vmem:[#allocation2 + $0x4e0] sm:$0xf]  ;;  %v3802_v35 = vld [vmem:[#allocation2 + $0x5ec] sm:$0xf0]  ;;  %97 = vst [vmem:[#allocation1 + $0x3] ss:$4 sm:$0xff] %v65_v30  ;;  %1374 = vmatpush.bf16.msra.mxu2 %v2763_v40  ;;  %v2751_v30 = vor.u32 %v3672_v19, %v2748_v20 }
  0x2e   :  { %v3258_v34 = vld [vmem:[#allocation2 + $0x5e0] sm:$0xf]  ;;  %v3806_v42 = vld [vmem:[#allocation2 + $0x60c] sm:$0xf0]  ;;  %v3131_v44 = vor.u32 %v3770_v33, %v3130_v32  ;;  %1388 = vmatpush.bf16.msra.mxu3 %v2891_v43  ;;  %v2732_v25 = vld [vmem:[#allocation2 + $0x1d0] sm:$0xf0] }
  0x2f   :  { %v3274_v41 = vld [vmem:[#allocation2 + $0x600] sm:$0xf]  ;;  %v3259_v45 = vor.u32 %v3802_v35, %v3258_v34  ;;  %v3766_v48 = vld [vmem:[#allocation2 + $0x4cc] sm:$0xf0]  ;;  %v3624_v27 = vld [vmem:[#allocation2 + $0x64] sm:$0xf] }
  0x30   :  { %v3114_v47 = vld [vmem:[#allocation2 + $0x4c0] sm:$0xf]  ;;  %v67_v50 = vld [vmem:[%s4169_s0 + $0x38] sm:$0xff]  ;;  %v3275_v51 = vor.u32 %v3806_v42, %v3274_v41  ;;  %1395 = vmatpush.bf16.msrb.mxu0 %v3131_v44  ;;  %v3704_v14 = vld [vmem:[#allocation2 + $0x2e4] sm:$0xf] }
  0x31   :  { %v3242_v49 = vld [vmem:[#allocation2 + $0x5c0] sm:$0xf]  ;;  %v3798_v52 = vld [vmem:[#allocation2 + $0x5cc] sm:$0xf0]  ;;  %v3115_v59 = vor.u32 %v3766_v48, %v3114_v47  ;;  %1409 = vmatpush.bf16.msrb.mxu1 %v3259_v45  ;;  %v2556_v28 = vld [vmem:[#allocation2 + $0x70] sm:$0xf0] }
  0x32   :  { %v69_v55 = vld [vmem:[%s4169_s0 + $0x46] sm:$0xff]  ;;  %v3762_v57 = vld [vmem:[#allocation2 + $0x4ac] sm:$0xf0]  ;;  %1437 = vmatpush.bf16.msrb.mxu3 %v2623_v46  ;;  %v3243_v2 = vor.u32 %v3798_v52, %v3242_v49  ;;  %1430 = vmatpush.bf16.msrb.mxu2 %v3275_v51  ;;  %v2559_v43 = vor.u32 %v3624_v27, %v2556_v28  ;;  %v2540_v49 = vld [vmem:[#allocation2 + $0x50] sm:$0xf0]  ;;  %v2735_v51 = vor.u32 %v3668_v24, %v2732_v25 }
  0x33   :  { %v3098_v56 = vld [vmem:[#allocation2 + $0x4a0] sm:$0xf]  ;;  %v71_v58 = vld [vmem:[%s4169_s0 + $0x54] sm:$0xff]  ;;  %v3664_v47 = vld [vmem:[#allocation2 + $0x1a4] sm:$0xf] }
  0x34   :  { %v3226_v60 = vld [vmem:[#allocation2 + $0x5a0] sm:$0xf]  ;;  %v3794_v61 = vld [vmem:[#allocation2 + $0x5ac] sm:$0xf0]  ;;  %1396 = vmatpush.bf16.msrb.mxu0 %v3115_v59  ;;  %v3099_v7 = vor.u32 %v3762_v57, %v3098_v56  ;;  %v3620_v48 = vld [vmem:[#allocation2 + $0x44] sm:$0xf] }
  0x35   :  { %v106_v0 = vld.sshfl [vmem:[#allocation1] sm:$0xff pattern:$0x73625140]  ;;  %v107_v1 = vld.sshfl [vmem:[#allocation1 + $0x8] sm:$0xff pattern:$0x73625140]  ;;  %1410 = vmatpush.bf16.msrb.mxu1 %v3243_v2  ;;  %v3227_v10 = vor.u32 %v3794_v61, %v3226_v60 }
  0x36   :  { %v108_v4 = vld.sshfl [vmem:[#allocation1 + $0x10] sm:$0xff pattern:$0x73625140]  ;;  %v109_v5 = vld.sshfl [vmem:[#allocation1 + $0x18] sm:$0xff pattern:$0x73625140]  ;;  %1438 = vmatpush.bf16.msrb.mxu3 %v2607_v3 }
  0x37   :  { %113 = vst [vmem:[#allocation1] ss:$4 sm:$0xff] %v67_v50  ;;  %v3082_v8 = vld [vmem:[#allocation2 + $0x480] sm:$0xf]  ;;  %v3758_v9 = vld [vmem:[#allocation2 + $0x48c] sm:$0xf0] }
  0x38   :  { %114 = vst [vmem:[#allocation1 + $0x1] ss:$4 sm:$0xff] %v69_v55  ;;  %v3210_v12 = vld [vmem:[#allocation2 + $0x580] sm:$0xf]  ;;  %v3790_v13 = vld [vmem:[#allocation2 + $0x58c] sm:$0xf0]  ;;  %1397 = vmatpush.bf16.msrb.mxu0 %v3099_v7  ;;  %v3083_v16 = vor.u32 %v3758_v9, %v3082_v8 }
  0x39   :  { %115 = vst [vmem:[#allocation1 + $0x2] ss:$4 sm:$0xff] %v71_v58  ;;  %1411 = vmatpush.bf16.msrb.mxu1 %v3227_v10  ;;  %v3211_v17 = vor.u32 %v3790_v13, %v3210_v12  ;;  %v3066_v21 = vld [vmem:[#allocation2 + $0x460] sm:$0xf]  ;;  %v3754_v22 = vld [vmem:[#allocation2 + $0x46c] sm:$0xf0]  ;;  %v2543_v58 = vor.u32 %v3620_v48, %v2540_v49 }
  0x3a   :  { %116 = vst [vmem:[#allocation1 + $0x3] ss:$4 sm:$0xff] %v73_v6  ;;  %1439 = vmatpush.bf16.msrb.mxu3 %v2591_v11  ;;  %v3194_v23 = vld [vmem:[#allocation2 + $0x560] sm:$0xf]  ;;  %v3786_v26 = vld [vmem:[#allocation2 + $0x56c] sm:$0xf0]  ;;  %v3067_v38 = vor.u32 %v3754_v22, %v3066_v21 }
  0x3b   :  { %v3050_v32 = vld [vmem:[#allocation2 + $0x440] sm:$0xf]  ;;  %v3750_v33 = vld [vmem:[#allocation2 + $0x44c] sm:$0xf0]  ;;  %v3195_v42 = vor.u32 %v3786_v26, %v3194_v23  ;;  %v2716_v52 = vld [vmem:[#allocation2 + $0x1b0] sm:$0xf0] }
  0x3c   :  { %1398 = vmatpush.bf16.msrb.mxu0 %v3083_v16  ;;  %v3178_v39 = vld [vmem:[#allocation2 + $0x540] sm:$0xf]  ;;  %v3782_v44 = vld [vmem:[#allocation2 + $0x54c] sm:$0xf0]  ;;  %v3051_v54 = vor.u32 %v3750_v33, %v3050_v32  ;;  %v3616_v61 = vld [vmem:[#allocation2 + $0x24] sm:$0xf]  ;;  %v2719_v63 = vor.u32 %v3664_v47, %v2716_v52 }
  0x3d   :  { %1412 = vmatpush.bf16.msrb.mxu1 %v3211_v17  ;;  %v60_v45 = vld [vmem:[%s4169_s0 + $0x8] sm:$0x3f]  ;;  %v62_v46 = vld [vmem:[%s4169_s0 + $0x16] sm:$0x3f]  ;;  %v3179_v57 = vor.u32 %v3782_v44, %v3178_v39  ;;  %v2684_v10 = vld [vmem:[#allocation2 + $0x170] sm:$0xf0] }
  0x3e   :  { %1440 = vmatpush.bf16.msrb.mxu3 %v2575_v18  ;;  %v64_v50 = vld [vmem:[%s4169_s0 + $0x24] sm:$0x3f]  ;;  %99 = vst [vmem:[#allocation1 + $0x20] ss:$4 sm:$0xff] %v60_v45  ;;  %v3746_v56 = vld [vmem:[#allocation2 + $0x42c] sm:$0xf0] }
  0x3f   :  { %v3034_v55 = vld [vmem:[#allocation2 + $0x420] sm:$0xf]  ;;  %101 = vst [vmem:[#allocation1 + $0x21] ss:$4 sm:$0xff] %v62_v46  ;;  %v3778_v60 = vld [vmem:[#allocation2 + $0x52c] sm:$0xf0] }
  0x40   :  { %1399 = vmatpush.bf16.msrb.mxu0 %v3067_v38  ;;  %v3162_v59 = vld [vmem:[#allocation2 + $0x520] sm:$0xf]  ;;  %103 = vst [vmem:[#allocation1 + $0x22] ss:$4 sm:$0xff] %v64_v50  ;;  %v3035_v2 = vor.u32 %v3746_v56, %v3034_v55  ;;  %v3742_v6 = vld [vmem:[#allocation2 + $0x40c] sm:$0xf0] }
  0x41   :  { %v123_v29 = vld.sshfl [vmem:[#allocation1 + $0x10] sm:$0xff pattern:$0x73625140]  ;;  %v121_v31 = vld.sshfl [vmem:[#allocation1] sm:$0xff pattern:$0x73625140]  ;;  %1413 = vmatpush.bf16.msrb.mxu1 %v3195_v42 }
  0x42   :  { %v4023_v34 = vpack.c.bf16 %v123_v29, %v108_v4  ;;  %v4025_v35 = vpack.c.bf16 %v121_v31, %v106_v0  ;;  %v124_v36 = vld.sshfl [vmem:[#allocation1 + $0x18] sm:$0xff pattern:$0x73625140]  ;;  %v122_v37 = vld.sshfl [vmem:[#allocation1 + $0x8] sm:$0xff pattern:$0x73625140]  ;;  %1441 = vmatpush.bf16.msrb.mxu3 %v2559_v43  ;;  %v3163_v4 = vor.u32 %v3778_v60, %v3162_v59 }
  0x43   :  { %v4027_v40 = vpack.c.bf16 %v124_v36, %v109_v5  ;;  %v4029_v41 = vpack.c.bf16 %v122_v37, %v107_v1  ;;  %v3660_v0 = vld [vmem:[#allocation2 + $0x184] sm:$0xf]  ;;  %v2700_v1 = vld [vmem:[#allocation2 + $0x190] sm:$0xf0]  ;;  %v3018_v3 = vld [vmem:[#allocation2 + $0x400] sm:$0xf]  ;;  %v2527_v5 = vor.u32 %v3616_v61, %v2524_v62 }
  0x44   :  { %1375 = vmatmul.bf16.vlgmr.msra.gmra.mxu2 %v4023_v34  ;;  %1347 = vmatmul.bf16.vlgmr.msra.gmra.mxu0 %v4025_v35  ;;  %v3146_v7 = vld [vmem:[#allocation2 + $0x500] sm:$0xf]  ;;  %v3774_v8 = vld [vmem:[#allocation2 + $0x50c] sm:$0xf0]  ;;  %v3656_v9 = vld [vmem:[#allocation2 + $0x164] sm:$0xf]  ;;  %v2703_v15 = vor.u32 %v3660_v0, %v2700_v1  ;;  %v3019_v21 = vor.u32 %v3742_v6, %v3018_v3 }
  0x45   :  { %1451 = vmatpush.bf16.msra.mxu2 %v2751_v30  ;;  %1389 = vmatmul.bf16.vlgmr.msra.gmra.mxu3 %v4027_v40  ;;  %v68_v11 = vld [vmem:[%s4169_s0 + $0x40] sm:$0x3f]  ;;  %v3612_v12 = vld [vmem:[#allocation2 + $0x4] sm:$0xf]  ;;  %v2508_v13 = vld [vmem:[#allocation2 + $0x10] sm:$0xf0]  ;;  %v3147_v27 = vor.u32 %v3774_v8, %v3146_v7  ;;  %v2687_v38 = vor.u32 %v3656_v9, %v2684_v10 }
  0x46   :  { %1361 = vmatmul.bf16.vlgmr.msra.gmra.mxu1 %v4029_v41  ;;  %1400 = vmatpush.bf16.msrb.mxu0 %v3051_v54  ;;  %v70_v16 = vld [vmem:[%s4169_s0 + $0x4e] sm:$0x3f]  ;;  %v2876_v17 = vld [vmem:[#allocation2 + $0x2f0] sm:$0xf0]  ;;  %v2511_v28 = vor.u32 %v3612_v12, %v2508_v13 }
  0x47   :  { %1414 = vmatpush.bf16.msrb.mxu1 %v3179_v57  ;;  %1442 = vmatpush.bf16.msrb.mxu3 %v2543_v58  ;;  %v3736_v18 = vld [vmem:[#allocation2 + $0x3e4] sm:$0xf]  ;;  %v3004_v19 = vld [vmem:[#allocation2 + $0x3f0] sm:$0xf0]  ;;  %v2879_v33 = vor.u32 %v3704_v14, %v2876_v17 }
  0x48   :  { %v72_v20 = vld [vmem:[%s4169_s0 + $0x5c] sm:$0x3f]  ;;  %v3768_v22 = vld [vmem:[#allocation2 + $0x4e4] sm:$0xf]  ;;  %v3007_v36 = vor.u32 %v3736_v18, %v3004_v19 }
  0x49   :  { %1452 = vmatpush.bf16.msra.mxu2 %v2735_v51  ;;  %v3132_v23 = vld [vmem:[#allocation2 + $0x4f0] sm:$0xf0]  ;;  %v74_v24 = vld [vmem:[%s4169_s0 + $0x6a] sm:$0x3f] }
  0x4a   :  { %1401 = vmatpush.bf16.msrb.mxu0 %v3035_v2  ;;  %v4059_v25 = vld.sshfl [vmem:[#allocation1 + $0x20] sm:$0xff pattern:$0x73625140]  ;;  %v4061_v26 = vld.sshfl [vmem:[#allocation1 + $0x28] sm:$0xff pattern:$0x73625140]  ;;  %v3135_v39 = vor.u32 %v3768_v22, %v3132_v23 }
  0x4b   :  { %1415 = vmatpush.bf16.msrb.mxu1 %v3163_v4  ;;  %1443 = vmatpush.bf16.msrb.mxu3 %v2527_v5  ;;  %v3700_v29 = vld [vmem:[#allocation2 + $0x2c4] sm:$0xf]  ;;  %v2668_v31 = vld [vmem:[#allocation2 + $0x150] sm:$0xf0] }
  0x4c   :  { %v3652_v30 = vld [vmem:[#allocation2 + $0x144] sm:$0xf]  ;;  %v112_v32 = vld.sshfl [vmem:[#allocation1 + $0x30] sm:$0xff pattern:$0x73625140] }
  0x4d   :  { %1453 = vmatpush.bf16.msra.mxu2 %v2719_v63  ;;  %v2860_v37 = vld [vmem:[#allocation2 + $0x2d0] sm:$0xf0]  ;;  %117 = vst [vmem:[#allocation1 + $0x20] ss:$4 sm:$0xff] %v68_v11  ;;  %v3732_v42 = vld [vmem:[#allocation2 + $0x3c4] sm:$0xf]  ;;  %v2671_v50 = vor.u32 %v3652_v30, %v2668_v31 }
  0x4e   :  { %v2988_v43 = vld [vmem:[#allocation2 + $0x3d0] sm:$0xf0]  ;;  %118 = vst [vmem:[#allocation1 + $0x21] ss:$4 sm:$0xff] %v70_v16  ;;  %1402 = vmatpush.bf16.msrb.mxu0 %v3019_v21  ;;  %v3764_v44 = vld [vmem:[#allocation2 + $0x4c4] sm:$0xf]  ;;  %v2863_v47 = vor.u32 %v3700_v29, %v2860_v37 }
  0x4f   :  { %v3116_v45 = vld [vmem:[#allocation2 + $0x4d0] sm:$0xf0]  ;;  %119 = vst [vmem:[#allocation1 + $0x22] ss:$4 sm:$0xff] %v72_v20  ;;  %1416 = vmatpush.bf16.msrb.mxu1 %v3147_v27  ;;  %1444 = vmatpush.bf16.msrb.mxu3 %v2511_v28  ;;  %v3648_v46 = vld [vmem:[#allocation2 + $0x124] sm:$0xf]  ;;  %v2991_v48 = vor.u32 %v3732_v42, %v2988_v43 }
  0x50   :  { %120 = vst [vmem:[#allocation1 + $0x23] ss:$4 sm:$0xff] %v74_v24  ;;  %v3696_v49 = vld [vmem:[#allocation2 + $0x2a4] sm:$0xf]  ;;  %v3119_v51 = vor.u32 %v3764_v44, %v3116_v45  ;;  %v2844_v52 = vld [vmem:[#allocation2 + $0x2b0] sm:$0xf0] }
  0x51   :  { %1454 = vmatpush.bf16.msra.mxu2 %v2703_v15  ;;  %v2972_v54 = vld [vmem:[#allocation2 + $0x3b0] sm:$0xf0]  ;;  %v3760_v56 = vld [vmem:[#allocation2 + $0x4a4] sm:$0xf]  ;;  %v2847_v60 = vor.u32 %v3696_v49, %v2844_v52 }
  0x52   :  { %1465 = vmatpush.bf16.msra.mxu0 %v2879_v33  ;;  %v2652_v55 = vld [vmem:[#allocation2 + $0x130] sm:$0xf0]  ;;  %v3644_v58 = vld [vmem:[#allocation2 + $0x104] sm:$0xf]  ;;  %v2975_v61 = vor.u32 %v3728_v53, %v2972_v54 }
  0x53   :  { %1479 = vmatpush.bf16.msra.mxu1 %v3007_v36  ;;  %1493 = vmatpush.bf16.msra.mxu3 %v3135_v39  ;;  %v3100_v57 = vld [vmem:[#allocation2 + $0x4b0] sm:$0xf0]  ;;  %v3692_v62 = vld [vmem:[#allocation2 + $0x284] sm:$0xf]  ;;  %v2655_v0 = vor.u32 %v3648_v46, %v2652_v55 }
  0x54   :  { %v2636_v59 = vld [vmem:[#allocation2 + $0x110] sm:$0xf0]  ;;  %v3800_v1 = vld [vmem:[#allocation2 + $0x5e4] sm:$0xf]  ;;  %v3103_v2 = vor.u32 %v3760_v56, %v3100_v57 }
  0x55   :  { %1455 = vmatpush.bf16.msra.mxu2 %v2687_v38  ;;  %1445 = vmatmul.bf16.vlgmr.msrb.gmra.mxu3 %v4025_v35  ;;  %v2828_v63 = vld [vmem:[#allocation2 + $0x290] sm:$0xf0]  ;;  %v3724_v3 = vld [vmem:[#allocation2 + $0x384] sm:$0xf]  ;;  %v2639_v16 = vor.u32 %v3644_v58, %v2636_v59 }
  0x56   :  { %1466 = vmatpush.bf16.msra.mxu0 %v2863_v47  ;;  %v2956_v4 = vld [vmem:[#allocation2 + $0x390] sm:$0xf0]  ;;  %v3756_v6 = vld [vmem:[#allocation2 + $0x484] sm:$0xf]  ;;  %v2831_v10 = vor.u32 %v3692_v62, %v2828_v63 }
  0x57   :  { %1480 = vmatpush.bf16.msra.mxu1 %v2991_v48  ;;  %1494 = vmatpush.bf16.msra.mxu3 %v3119_v51  ;;  %v3260_v5 = vld [vmem:[#allocation2 + $0x5f0] sm:$0xf0]  ;;  %v127_v8 = vld.sshfl [vmem:[#allocation1 + $0x30] sm:$0xff pattern:$0x73625140]  ;;  %v2959_v14 = vor.u32 %v3724_v3, %v2956_v4 }
  0x58   :  { %v3084_v7 = vld [vmem:[#allocation2 + $0x490] sm:$0xf0]  ;;  %v125_v9 = vld.sshfl [vmem:[#allocation1 + $0x20] sm:$0xff pattern:$0x73625140]  ;;  %v4064_v11 = vpack.c.bf16 %v127_v8, %v112_v32  ;;  %v3263_v22 = vor.u32 %v3800_v1, %v3260_v5 }
  0x59   :  { %1456 = vmatpush.bf16.msra.mxu2 %v2671_v50  ;;  %v4067_v12 = vpack.c.bf16 %v125_v9, %v4059_v25  ;;  %v126_v13 = vld.sshfl [vmem:[#allocation1 + $0x28] sm:$0xff pattern:$0x73625140]  ;;  %v3087_v18 = vor.u32 %v3756_v6, %v3084_v7  ;;  %v2812_v19 = vld [vmem:[#allocation2 + $0x270] sm:$0xf0] }
  0x5a   :  { %1467 = vmatpush.bf16.msra.mxu0 %v2847_v60  ;;  %v3688_v15 = vld [vmem:[#allocation2 + $0x264] sm:$0xf]  ;;  %v4070_v17 = vpack.c.bf16 %v126_v13, %v4061_v26  ;;  %v2940_v21 = vld [vmem:[#allocation2 + $0x370] sm:$0xf0]  ;;  %3288 = vmatmul.msk.bf16.vlgmr.msrb.gmra.mxu2 %vm1335_vm0, %v4064_v11  ;;  %v3643_v3 = vld [vmem:[#allocation2 + $0xf4] sm:$0xf0] }
  0x5b   :  { %1481 = vmatpush.bf16.msra.mxu1 %v2975_v61  ;;  %1495 = vmatpush.bf16.msra.mxu3 %v3103_v2  ;;  %v3720_v20 = vld [vmem:[#allocation2 + $0x364] sm:$0xf]  ;;  %v3068_v24 = vld [vmem:[#allocation2 + $0x470] sm:$0xf0]  ;;  %v2815_v26 = vor.u32 %v3688_v15, %v2812_v19  ;;  %v2626_v2 = vld [vmem:[#allocation2 + $0xe8] sm:$0xf] }
  0x5c   :  { %1403 = vmatmul.bf16.vlgmr.msrb.gmra.mxu0 %v4067_v12  ;;  %v3752_v23 = vld [vmem:[#allocation2 + $0x464] sm:$0xf]  ;;  %1417 = vmatmul.bf16.vlgmr.msrb.gmra.mxu1 %v4070_v17  ;;  %v3244_v27 = vld [vmem:[#allocation2 + $0x5d0] sm:$0xf0]  ;;  %v2943_v28 = vor.u32 %v3720_v20, %v2940_v21  ;;  %v2754_v5 = vld [vmem:[#allocation2 + $0x1e8] sm:$0xf]  ;;  %v2627_v13 = vor.u32 %v3643_v3, %v2626_v2 }
  0x5d   :  { %1457 = vmatpush.bf16.msra.mxu2 %v2655_v0  ;;  %v3796_v25 = vld [vmem:[#allocation2 + $0x5c4] sm:$0xf]  ;;  %v3071_v30 = vor.u32 %v3752_v23, %v3068_v24  ;;  %v2796_v31 = vld [vmem:[#allocation2 + $0x250] sm:$0xf0]  ;;  %v3675_v6 = vld [vmem:[#allocation2 + $0x1f4] sm:$0xf0] }
  0x5e   :  { %1468 = vmatpush.bf16.msra.mxu0 %v2831_v10  ;;  %v3684_v29 = vld [vmem:[#allocation2 + $0x244] sm:$0xf]  ;;  %v2924_v33 = vld [vmem:[#allocation2 + $0x350] sm:$0xf0]  ;;  %v3247_v36 = vor.u32 %v3796_v25, %v3244_v27  ;;  %v2755_v19 = vor.u32 %v3675_v6, %v2754_v5  ;;  %v3639_v20 = vld [vmem:[#allocation2 + $0xd4] sm:$0xf0] }
  0x5f   :  { %1482 = vmatpush.bf16.msra.mxu1 %v2959_v14  ;;  %1496 = vmatpush.bf16.msra.mxu3 %v3087_v18  ;;  %v3716_v32 = vld [vmem:[#allocation2 + $0x344] sm:$0xf]  ;;  %v3052_v38 = vld [vmem:[#allocation2 + $0x450] sm:$0xf0]  ;;  %v2799_v43 = vor.u32 %v3684_v29, %v2796_v31  ;;  %v2610_v14 = vld [vmem:[#allocation2 + $0xc8] sm:$0xf] }
  0x60   :  { %v3748_v37 = vld [vmem:[#allocation2 + $0x444] sm:$0xf]  ;;  %v3228_v42 = vld [vmem:[#allocation2 + $0x5b0] sm:$0xf0]  ;;  %v2927_v44 = vor.u32 %v3716_v32, %v2924_v33  ;;  %v2882_v21 = vld [vmem:[#allocation2 + $0x2e8] sm:$0xf] }
  0x61   :  { %1458 = vmatpush.bf16.msra.mxu2 %v2639_v16  ;;  %v3792_v39 = vld [vmem:[#allocation2 + $0x5a4] sm:$0xf]  ;;  %v3055_v46 = vor.u32 %v3748_v37, %v3052_v38  ;;  %v2780_v47 = vld [vmem:[#allocation2 + $0x230] sm:$0xf0]  ;;  %v2738_v24 = vld [vmem:[#allocation2 + $0x1c8] sm:$0xf] }
  0x62   :  { %1469 = vmatpush.bf16.msra.mxu0 %v2815_v26  ;;  %v3680_v45 = vld [vmem:[#allocation2 + $0x224] sm:$0xf]  ;;  %v2908_v49 = vld [vmem:[#allocation2 + $0x330] sm:$0xf0]  ;;  %v3231_v50 = vor.u32 %v3792_v39, %v3228_v42  ;;  %v3671_v25 = vld [vmem:[#allocation2 + $0x1d4] sm:$0xf0] }
  0x63   :  { %1483 = vmatpush.bf16.msra.mxu1 %v2943_v28  ;;  %1497 = vmatpush.bf16.msra.mxu3 %v3071_v30  ;;  %v3712_v48 = vld [vmem:[#allocation2 + $0x324] sm:$0xf]  ;;  %v3036_v52 = vld [vmem:[#allocation2 + $0x430] sm:$0xf0]  ;;  %v2783_v55 = vor.u32 %v3680_v45, %v2780_v47  ;;  %v2611_v28 = vor.u32 %v3639_v20, %v2610_v14  ;;  %v2594_v29 = vld [vmem:[#allocation2 + $0xa8] sm:$0xf]  ;;  %v2739_v32 = vor.u32 %v3671_v25, %v2738_v24 }
  0x64   :  { %v3744_v51 = vld [vmem:[#allocation2 + $0x424] sm:$0xf]  ;;  %v3212_v54 = vld [vmem:[#allocation2 + $0x590] sm:$0xf0]  ;;  %v2911_v56 = vor.u32 %v3712_v48, %v2908_v49  ;;  %v3635_v33 = vld [vmem:[#allocation2 + $0xb4] sm:$0xf0] }
  0x65   :  { %1507 = vmatpush.bf16.msrb.mxu2 %v3263_v22  ;;  %v3788_v53 = vld [vmem:[#allocation2 + $0x584] sm:$0xf]  ;;  %v2764_v58 = vld [vmem:[#allocation2 + $0x210] sm:$0xf0]  ;;  %v3039_v60 = vor.u32 %v3744_v51, %v3036_v52  ;;  %v3707_v22 = vld [vmem:[#allocation2 + $0x2f4] sm:$0xf0] }
  0x66   :  { %1470 = vmatpush.bf16.msra.mxu0 %v2799_v43  ;;  %v3676_v57 = vld [vmem:[#allocation2 + $0x204] sm:$0xf]  ;;  %v2892_v62 = vld [vmem:[#allocation2 + $0x310] sm:$0xf0]  ;;  %v3215_v0 = vor.u32 %v3788_v53, %v3212_v54  ;;  %v2883_v30 = vor.u32 %v3707_v22, %v2882_v21  ;;  %v3703_v37 = vld [vmem:[#allocation2 + $0x2d4] sm:$0xf0] }
  0x67   :  { %1484 = vmatpush.bf16.msra.mxu1 %v2927_v44  ;;  %v3784_v59 = vld [vmem:[#allocation2 + $0x564] sm:$0xf]  ;;  %1498 = vmatpush.bf16.msra.mxu3 %v3055_v46  ;;  %v3020_v1 = vld [vmem:[#allocation2 + $0x410] sm:$0xf0]  ;;  %v2767_v7 = vor.u32 %v3676_v57, %v2764_v58  ;;  %v2722_v39 = vld [vmem:[#allocation2 + $0x1a8] sm:$0xf]  ;;  %v2595_v44 = vor.u32 %v3635_v33, %v2594_v29 }
  0x68   :  { %v3708_v61 = vld [vmem:[#allocation2 + $0x304] sm:$0xf]  ;;  %v3196_v4 = vld [vmem:[#allocation2 + $0x570] sm:$0xf0]  ;;  %v3667_v42 = vld [vmem:[#allocation2 + $0x1b4] sm:$0xf0] }
  0x69   :  { %1508 = vmatpush.bf16.msrb.mxu2 %v3247_v36  ;;  %v3740_v63 = vld [vmem:[#allocation2 + $0x404] sm:$0xf]  ;;  %v2895_v8 = vor.u32 %v3708_v61, %v2892_v62  ;;  %v3276_v16 = vld [vmem:[#allocation2 + $0x610] sm:$0xf0]  ;;  %v3199_v18 = vor.u32 %v3784_v59, %v3196_v4  ;;  %v2866_v36 = vld [vmem:[#allocation2 + $0x2c8] sm:$0xf]  ;;  %v2723_v48 = vor.u32 %v3667_v42, %v2722_v39 }
  0x6a   :  { %1471 = vmatpush.bf16.msra.mxu0 %v2783_v55  ;;  %v3780_v9 = vld [vmem:[#allocation2 + $0x544] sm:$0xf]  ;;  %v3023_v10 = vor.u32 %v3740_v63, %v3020_v1  ;;  %1459 = vmatmul.bf16.vlgmr.msra.gmra.mxu2 %v4029_v41  ;;  %v3180_v23 = vld [vmem:[#allocation2 + $0x550] sm:$0xf0]  ;;  %v2578_v45 = vld [vmem:[#allocation2 + $0x88] sm:$0xf]  ;;  %v2867_v46 = vor.u32 %v3703_v37, %v2866_v36 }
  0x6b   :  { %1485 = vmatpush.bf16.msra.mxu1 %v2911_v56  ;;  %1499 = vmatpush.bf16.msra.mxu3 %v3039_v60  ;;  %v3804_v15 = vld [vmem:[#allocation2 + $0x604] sm:$0xf]  ;;  %v3183_v31 = vor.u32 %v3780_v9, %v3180_v23  ;;  %v3164_v38 = vld [vmem:[#allocation2 + $0x530] sm:$0xf0]  ;;  %v3631_v49 = vld [vmem:[#allocation2 + $0x94] sm:$0xf0] }
  0x6c   :  { %v3279_v27 = vor.u32 %v3804_v15, %v3276_v16  ;;  %v3776_v26 = vld [vmem:[#allocation2 + $0x524] sm:$0xf]  ;;  %v3699_v51 = vld [vmem:[#allocation2 + $0x2b4] sm:$0xf0]  ;;  %v3148_v52 = vld [vmem:[#allocation2 + $0x510] sm:$0xf0]  ;;  %v2579_v57 = vor.u32 %v3631_v49, %v2578_v45 }
  0x6d   :  { %1509 = vmatpush.bf16.msrb.mxu2 %v3231_v50  ;;  %v3772_v43 = vld [vmem:[#allocation2 + $0x504] sm:$0xf]  ;;  %v3167_v47 = vor.u32 %v3776_v26, %v3164_v38  ;;  %v2850_v50 = vld [vmem:[#allocation2 + $0x2a8] sm:$0xf]  ;;  %v3663_v54 = vld [vmem:[#allocation2 + $0x194] sm:$0xf0] }
  0x6e   :  { %1472 = vmatpush.bf16.msra.mxu0 %v2767_v7  ;;  %v2706_v53 = vld [vmem:[#allocation2 + $0x188] sm:$0xf]  ;;  %v3739_v56 = vld [vmem:[#allocation2 + $0x3f4] sm:$0xf0]  ;;  %v2851_v58 = vor.u32 %v3699_v51, %v2850_v50  ;;  %v3151_v59 = vor.u32 %v3772_v43, %v3148_v52 }
  0x6f   :  { %1486 = vmatpush.bf16.msra.mxu1 %v2895_v8  ;;  %1500 = vmatpush.bf16.msra.mxu3 %v3023_v10  ;;  %v3010_v55 = vld [vmem:[#allocation2 + $0x3e8] sm:$0xf]  ;;  %v2707_v60 = vor.u32 %v3663_v54, %v2706_v53  ;;  %v3627_v62 = vld [vmem:[#allocation2 + $0x74] sm:$0xf0] }
  0x70   :  { %v2562_v61 = vld [vmem:[#allocation2 + $0x68] sm:$0xf]  ;;  %v3659_v1 = vld [vmem:[#allocation2 + $0x174] sm:$0xf0] }
  0x71   :  { %1510 = vmatpush.bf16.msrb.mxu2 %v3215_v0  ;;  %1473 = vmatmul.bf16.vlgmr.msra.gmra.mxu0 %v4023_v34  ;;  %v2690_v63 = vld [vmem:[#allocation2 + $0x168] sm:$0xf]  ;;  %v3011_v0 = vor.u32 %v3739_v56, %v3010_v55  ;;  %v3695_v3 = vld [vmem:[#allocation2 + $0x294] sm:$0xf0]  ;;  %v2563_v6 = vor.u32 %v3627_v62, %v2562_v61 }
  0x72   :  { %1487 = vmatmul.bf16.vlgmr.msra.gmra.mxu1 %v4027_v40  ;;  %1501 = vmatmul.bf16.vlgmr.msra.gmra.mxu3 %v4067_v12  ;;  %v2834_v2 = vld [vmem:[#allocation2 + $0x288] sm:$0xf]  ;;  %v3735_v5 = vld [vmem:[#allocation2 + $0x3d4] sm:$0xf0]  ;;  %v2691_v8 = vor.u32 %v3659_v1, %v2690_v63 }
  0x73   :  { %1535 = vmatpush.bf16.msrb.mxu1 %v2627_v13  ;;  %1549 = vmatpush.bf16.msrb.mxu3 %v2755_v19  ;;  %v2994_v4 = vld [vmem:[#allocation2 + $0x3c8] sm:$0xf]  ;;  %v3623_v9 = vld [vmem:[#allocation2 + $0x54] sm:$0xf0]  ;;  %v2835_v14 = vor.u32 %v3695_v3, %v2834_v2 }
  0x74   :  { %1528 = vmatpush.bf16.msrb.mxu0 %v3279_v27  ;;  %v2546_v7 = vld [vmem:[#allocation2 + $0x48] sm:$0xf]  ;;  %v3655_v13 = vld [vmem:[#allocation2 + $0x154] sm:$0xf0]  ;;  %v2995_v15 = vor.u32 %v3735_v5, %v2994_v4 }
  0x75   :  { %1511 = vmatpush.bf16.msrb.mxu2 %v3199_v18  ;;  %v2674_v10 = vld [vmem:[#allocation2 + $0x148] sm:$0xf]  ;;  %v3691_v18 = vld [vmem:[#allocation2 + $0x274] sm:$0xf0]  ;;  %v2547_v21 = vor.u32 %v3623_v9, %v2546_v7 }
  0x76   :  { %v2818_v16 = vld [vmem:[#allocation2 + $0x268] sm:$0xf]  ;;  %v3731_v20 = vld [vmem:[#allocation2 + $0x3b4] sm:$0xf0]  ;;  %v2675_v22 = vor.u32 %v3655_v13, %v2674_v10 }
  0x77   :  { %1536 = vmatpush.bf16.msrb.mxu1 %v2611_v28  ;;  %1550 = vmatpush.bf16.msrb.mxu3 %v2739_v32  ;;  %v2978_v19 = vld [vmem:[#allocation2 + $0x3a8] sm:$0xf]  ;;  %v3619_v24 = vld [vmem:[#allocation2 + $0x34] sm:$0xf0]  ;;  %v2819_v27 = vor.u32 %v3691_v18, %v2818_v16 }
  0x78   :  { %1563 = vmatpush.bf16.msra.mxu0 %v2883_v30  ;;  %v2530_v23 = vld [vmem:[#allocation2 + $0x28] sm:$0xf]  ;;  %v2979_v26 = vor.u32 %v3731_v20, %v2978_v19  ;;  %v3651_v28 = vld [vmem:[#allocation2 + $0x134] sm:$0xf0]  ;;  %v3673_v20 = vld [vmem:[#allocation2 + $0x1ec] sm:$0xf] }
  0x79   :  { %1512 = vmatpush.bf16.msrb.mxu2 %v3183_v31  ;;  %v2658_v25 = vld [vmem:[#allocation2 + $0x128] sm:$0xf]  ;;  %v3687_v30 = vld [vmem:[#allocation2 + $0x254] sm:$0xf0]  ;;  %v2531_v33 = vor.u32 %v3619_v24, %v2530_v23 }
  0x7a   :  { %v2802_v29 = vld [vmem:[#allocation2 + $0x248] sm:$0xf]  ;;  %v3727_v32 = vld [vmem:[#allocation2 + $0x394] sm:$0xf0]  ;;  %v2659_v37 = vor.u32 %v3651_v28, %v2658_v25 }
  0x7b   :  { %1537 = vmatpush.bf16.msrb.mxu1 %v2595_v44  ;;  %1551 = vmatpush.bf16.msrb.mxu3 %v2723_v48  ;;  %v2962_v31 = vld [vmem:[#allocation2 + $0x388] sm:$0xf]  ;;  %v3615_v39 = vld [vmem:[#allocation2 + $0x14] sm:$0xf0]  ;;  %v2803_v43 = vor.u32 %v3687_v30, %v2802_v29  ;;  %v3641_v30 = vld [vmem:[#allocation2 + $0xec] sm:$0xf] }
  0x7c   :  { %1564 = vmatpush.bf16.msra.mxu0 %v2867_v46  ;;  %v2946_v36 = vld [vmem:[#allocation2 + $0x368] sm:$0xf]  ;;  %v2963_v44 = vor.u32 %v3727_v32, %v2962_v31  ;;  %v3647_v45 = vld [vmem:[#allocation2 + $0x114] sm:$0xf0]  ;;  %v2628_v31 = vld [vmem:[#allocation2 + $0xf8] sm:$0xf0] }
  0x7d   :  { %1513 = vmatpush.bf16.msrb.mxu2 %v3167_v47  ;;  %v2514_v38 = vld [vmem:[#allocation2 + $0x8] sm:$0xf]  ;;  %v3771_v47 = vld [vmem:[#allocation2 + $0x4f4] sm:$0xf0] }
  0x7e   :  { %v2642_v42 = vld [vmem:[#allocation2 + $0x108] sm:$0xf]  ;;  %v3723_v48 = vld [vmem:[#allocation2 + $0x374] sm:$0xf0]  ;;  %v2515_v51 = vor.u32 %v3615_v39, %v2514_v38 }
  0x7f   :  { %1538 = vmatpush.bf16.msrb.mxu1 %v2579_v57  ;;  %1552 = vmatpush.bf16.msrb.mxu3 %v2707_v60  ;;  %v3138_v46 = vld [vmem:[#allocation2 + $0x4e8] sm:$0xf]  ;;  %v3803_v50 = vld [vmem:[#allocation2 + $0x5f4] sm:$0xf0]  ;;  %v2643_v54 = vor.u32 %v3647_v45, %v2642_v42  ;;  %v2947_v56 = vor.u32 %v3723_v48, %v2946_v36  ;;  %v3669_v36 = vld [vmem:[#allocation2 + $0x1cc] sm:$0xf] }
  0x80   :  { %1565 = vmatpush.bf16.msra.mxu0 %v2851_v58  ;;  %v3266_v49 = vld [vmem:[#allocation2 + $0x5e8] sm:$0xf]  ;;  %v3683_v53 = vld [vmem:[#allocation2 + $0x234] sm:$0xf0]  ;;  %v3139_v55 = vor.u32 %v3771_v47, %v3138_v46  ;;  %v3637_v47 = vld [vmem:[#allocation2 + $0xcc] sm:$0xf] }
  0x81   :  { %1514 = vmatpush.bf16.msrb.mxu2 %v3151_v59  ;;  %3289 = vmatmul.msk.bf16.vlgmr.msrb.gmra.mxu0 %vm1335_vm0, %v4064_v11  ;;  %v2786_v52 = vld [vmem:[#allocation2 + $0x228] sm:$0xf]  ;;  %v3267_v58 = vor.u32 %v3803_v50, %v3266_v49  ;;  %v3767_v60 = vld [vmem:[#allocation2 + $0x4d4] sm:$0xf0]  ;;  %v2612_v48 = vld [vmem:[#allocation2 + $0xd8] sm:$0xf0] }
  0x82   :  { %v2930_v57 = vld [vmem:[#allocation2 + $0x348] sm:$0xf]  ;;  %v3719_v61 = vld [vmem:[#allocation2 + $0x354] sm:$0xf0]  ;;  %v2787_v62 = vor.u32 %v3683_v53, %v2786_v52  ;;  %v2724_v52 = vld [vmem:[#allocation2 + $0x1b8] sm:$0xf0] }
  0x83   :  { %1539 = vmatpush.bf16.msrb.mxu1 %v2563_v6  ;;  %1553 = vmatpush.bf16.msrb.mxu3 %v2691_v8  ;;  %v3122_v59 = vld [vmem:[#allocation2 + $0x4c8] sm:$0xf]  ;;  %v3679_v2 = vld [vmem:[#allocation2 + $0x214] sm:$0xf0]  ;;  %v2931_v6 = vor.u32 %v3719_v61, %v2930_v57 }
  0x84   :  { %1515 = vmatmul.bf16.vlgmr.msrb.gmra.mxu2 %v4070_v17  ;;  %1566 = vmatpush.bf16.msra.mxu0 %v2835_v14  ;;  %v3250_v63 = vld [vmem:[#allocation2 + $0x5c8] sm:$0xf]  ;;  %v3123_v3 = vor.u32 %v3767_v60, %v3122_v59  ;;  %v3807_v5 = vld [vmem:[#allocation2 + $0x614] sm:$0xf0]  ;;  %v3633_v59 = vld [vmem:[#allocation2 + $0xac] sm:$0xf] }
  0x85   :  { %1577 = vmatpush.bf16.msra.mxu2 %v3011_v0  ;;  %v3799_v0 = vld [vmem:[#allocation2 + $0x5d4] sm:$0xf0]  ;;  %v2770_v1 = vld [vmem:[#allocation2 + $0x208] sm:$0xf]  ;;  %v2596_v60 = vld [vmem:[#allocation2 + $0xb8] sm:$0xf0] }
  0x86   :  { %v3282_v4 = vld [vmem:[#allocation2 + $0x608] sm:$0xf]  ;;  %v3251_v8 = vor.u32 %v3799_v0, %v3250_v63  ;;  %v3763_v10 = vld [vmem:[#allocation2 + $0x4b4] sm:$0xf0]  ;;  %v2771_v14 = vor.u32 %v3679_v2, %v2770_v1  ;;  %v3661_v63 = vld [vmem:[#allocation2 + $0x18c] sm:$0xf] }
  0x87   :  { %1540 = vmatpush.bf16.msrb.mxu1 %v2547_v21  ;;  %1554 = vmatpush.bf16.msrb.mxu3 %v2675_v22  ;;  %v2914_v7 = vld [vmem:[#allocation2 + $0x328] sm:$0xf]  ;;  %v3715_v13 = vld [vmem:[#allocation2 + $0x334] sm:$0xf0]  ;;  %v3283_v18 = vor.u32 %v3807_v5, %v3282_v4  ;;  %v2756_v21 = vld [vmem:[#allocation2 + $0x1f8] sm:$0xf0]  ;;  %v2599_v4 = vor.u32 %v3633_v59, %v2596_v60 }
  0x88   :  { %1567 = vmatpush.bf16.msra.mxu0 %v2819_v27  ;;  %v3106_v9 = vld [vmem:[#allocation2 + $0x4a8] sm:$0xf]  ;;  %v3795_v16 = vld [vmem:[#allocation2 + $0x5b4] sm:$0xf0]  ;;  %v2915_v22 = vor.u32 %v3715_v13, %v2914_v7  ;;  %v2759_v32 = vor.u32 %v3673_v20, %v2756_v21  ;;  %v2708_v0 = vld [vmem:[#allocation2 + $0x198] sm:$0xf0] }
  0x89   :  { %1578 = vmatpush.bf16.msra.mxu2 %v2995_v15  ;;  %v3234_v15 = vld [vmem:[#allocation2 + $0x5a8] sm:$0xf]  ;;  %v3107_v19 = vor.u32 %v3763_v10, %v3106_v9  ;;  %v3759_v27 = vld [vmem:[#allocation2 + $0x494] sm:$0xf0]  ;;  %v3629_v7 = vld [vmem:[#allocation2 + $0x8c] sm:$0xf]  ;;  %v2711_v9 = vor.u32 %v3661_v63, %v2708_v0 }
  0x8a   :  { %v2898_v23 = vld [vmem:[#allocation2 + $0x308] sm:$0xf]  ;;  %v3235_v24 = vor.u32 %v3795_v16, %v3234_v15  ;;  %v3791_v29 = vld [vmem:[#allocation2 + $0x594] sm:$0xf0]  ;;  %v3657_v13 = vld [vmem:[#allocation2 + $0x16c] sm:$0xf] }
  0x8b   :  { %1541 = vmatpush.bf16.msrb.mxu1 %v2531_v33  ;;  %1555 = vmatpush.bf16.msrb.mxu3 %v2659_v37  ;;  %v3090_v25 = vld [vmem:[#allocation2 + $0x488] sm:$0xf]  ;;  %v2740_v37 = vld [vmem:[#allocation2 + $0x1d8] sm:$0xf0]  ;;  %v3787_v46 = vld [vmem:[#allocation2 + $0x574] sm:$0xf0] }
  0x8c   :  { %1568 = vmatpush.bf16.msra.mxu0 %v2803_v43  ;;  %v3218_v28 = vld [vmem:[#allocation2 + $0x588] sm:$0xf]  ;;  %v3091_v33 = vor.u32 %v3759_v27, %v3090_v25  ;;  %v3755_v43 = vld [vmem:[#allocation2 + $0x474] sm:$0xf0]  ;;  %v2743_v49 = vor.u32 %v3669_v36, %v2740_v37  ;;  %v3625_v15 = vld [vmem:[#allocation2 + $0x6c] sm:$0xf] }
  0x8d   :  { %1579 = vmatpush.bf16.msra.mxu2 %v2979_v26  ;;  %v3711_v26 = vld [vmem:[#allocation2 + $0x314] sm:$0xf0]  ;;  %v3219_v39 = vor.u32 %v3791_v29, %v3218_v28  ;;  %v3074_v42 = vld [vmem:[#allocation2 + $0x468] sm:$0xf]  ;;  %v2564_v25 = vld [vmem:[#allocation2 + $0x78] sm:$0xf0] }
  0x8e   :  { %v2899_v38 = vor.u32 %v3711_v26, %v2898_v23  ;;  %v3202_v45 = vld [vmem:[#allocation2 + $0x568] sm:$0xf]  ;;  %v3075_v50 = vor.u32 %v3755_v43, %v3074_v42  ;;  %v3705_v23 = vld [vmem:[#allocation2 + $0x2ec] sm:$0xf]  ;;  %v3012_v28 = vld [vmem:[#allocation2 + $0x3f8] sm:$0xf0]  ;;  %v2567_v36 = vor.u32 %v3625_v15, %v2564_v25 }
  0x8f   :  { %1542 = vmatpush.bf16.msrb.mxu1 %v2515_v51  ;;  %1556 = vmatpush.bf16.msrb.mxu3 %v2643_v54  ;;  %v3665_v51 = vld [vmem:[#allocation2 + $0x1ac] sm:$0xf]  ;;  %v3203_v53 = vor.u32 %v3787_v46, %v3202_v45  ;;  %v3058_v54 = vld [vmem:[#allocation2 + $0x448] sm:$0xf]  ;;  %v2868_v42 = vld [vmem:[#allocation2 + $0x2d8] sm:$0xf0] }
  0x90   :  { %1569 = vmatpush.bf16.msra.mxu0 %v2787_v62  ;;  %v3186_v57 = vld [vmem:[#allocation2 + $0x548] sm:$0xf]  ;;  %v2727_v61 = vor.u32 %v3665_v51, %v2724_v52  ;;  %v3737_v26 = vld [vmem:[#allocation2 + $0x3ec] sm:$0xf]  ;;  %v2548_v43 = vld [vmem:[#allocation2 + $0x58] sm:$0xf0] }
  0x91   :  { %1580 = vmatpush.bf16.msra.mxu2 %v2963_v44  ;;  %v2631_v44 = vor.u32 %v3641_v30, %v2628_v31  ;;  %v3042_v2 = vld [vmem:[#allocation2 + $0x428] sm:$0xf]  ;;  %v3653_v30 = vld [vmem:[#allocation2 + $0x14c] sm:$0xf]  ;;  %v2676_v31 = vld [vmem:[#allocation2 + $0x158] sm:$0xf0] }
  0x92   :  { %1543 = vmatmul.bf16.vlgmr.msrb.gmra.mxu1 %v4025_v35  ;;  %1557 = vmatmul.bf16.vlgmr.msrb.gmra.mxu3 %v4029_v41  ;;  %v3170_v5 = vld [vmem:[#allocation2 + $0x528] sm:$0xf]  ;;  %v3621_v37 = vld [vmem:[#allocation2 + $0x4c] sm:$0xf]  ;;  %v2996_v46 = vld [vmem:[#allocation2 + $0x3d8] sm:$0xf0] }
  0x93   :  { %1591 = vmatpush.bf16.msra.mxu1 %v3139_v55  ;;  %1605 = vmatpush.bf16.msra.mxu3 %v3267_v58  ;;  %v3751_v55 = vld [vmem:[#allocation2 + $0x454] sm:$0xf0]  ;;  %v3154_v20 = vld [vmem:[#allocation2 + $0x508] sm:$0xf]  ;;  %v3733_v45 = vld [vmem:[#allocation2 + $0x3cc] sm:$0xf] }
  0x94   :  { %1570 = vmatpush.bf16.msra.mxu0 %v2771_v14  ;;  %v3783_v58 = vld [vmem:[#allocation2 + $0x554] sm:$0xf0]  ;;  %v3059_v62 = vor.u32 %v3751_v55, %v3058_v54  ;;  %v2692_v14 = vld [vmem:[#allocation2 + $0x178] sm:$0xf0]  ;;  %v3617_v51 = vld [vmem:[#allocation2 + $0x2c] sm:$0xf]  ;;  %v2999_v52 = vor.u32 %v3733_v45, %v2996_v46 }
  0x95   :  { %1581 = vmatpush.bf16.msra.mxu2 %v2947_v56  ;;  %v2615_v56 = vor.u32 %v3637_v47, %v2612_v48  ;;  %v3187_v1 = vor.u32 %v3783_v58, %v3186_v57  ;;  %v2695_v27 = vor.u32 %v3657_v13, %v2692_v14  ;;  %v3649_v47 = vld [vmem:[#allocation2 + $0x12c] sm:$0xf]  ;;  %v2660_v48 = vld [vmem:[#allocation2 + $0x138] sm:$0xf0] }
  0x96   :  { %v2852_v54 = vld [vmem:[#allocation2 + $0x2b8] sm:$0xf0]  ;;  %v3729_v57 = vld [vmem:[#allocation2 + $0x3ac] sm:$0xf] }
  0x97   :  { %1592 = vmatpush.bf16.msra.mxu1 %v3123_v3  ;;  %1606 = vmatpush.bf16.msra.mxu3 %v3251_v8  ;;  %v3747_v3 = vld [vmem:[#allocation2 + $0x434] sm:$0xf0]  ;;  %v2580_v8 = vld [vmem:[#allocation2 + $0x98] sm:$0xf0]  ;;  %v3645_v59 = vld [vmem:[#allocation2 + $0x10c] sm:$0xf] }
  0x98   :  { %1626 = vmatpush.bf16.msrb.mxu0 %v3283_v18  ;;  %v3043_v10 = vor.u32 %v3747_v3, %v3042_v2  ;;  %v3026_v18 = vld [vmem:[#allocation2 + $0x408] sm:$0xf]  ;;  %v2583_v21 = vor.u32 %v3629_v7, %v2580_v8  ;;  %v2532_v55 = vld [vmem:[#allocation2 + $0x38] sm:$0xf0]  ;;  %v3693_v3 = vld [vmem:[#allocation2 + $0x28c] sm:$0xf] }
  0x99   :  { %1582 = vmatpush.bf16.msra.mxu2 %v2931_v6  ;;  %1571 = vmatmul.bf16.vlgmr.msra.gmra.mxu0 %v4023_v34  ;;  %v3779_v6 = vld [vmem:[#allocation2 + $0x534] sm:$0xf0]  ;;  %v2980_v58 = vld [vmem:[#allocation2 + $0x3b8] sm:$0xf0]  ;;  %v2535_v0 = vor.u32 %v3617_v51, %v2532_v55  ;;  %v3725_v7 = vld [vmem:[#allocation2 + $0x38c] sm:$0xf] }
  0x9a   :  { %v3171_v16 = vor.u32 %v3779_v6, %v3170_v5  ;;  %v2644_v60 = vld [vmem:[#allocation2 + $0x118] sm:$0xf0]  ;;  %v2983_v2 = vor.u32 %v3729_v57, %v2980_v58  ;;  %v3797_v15 = vld [vmem:[#allocation2 + $0x5cc] sm:$0xf] }
  0x9b   :  { %1593 = vmatpush.bf16.msra.mxu1 %v3107_v19  ;;  %1607 = vmatpush.bf16.msra.mxu3 %v3235_v24  ;;  %v3743_v19 = vld [vmem:[#allocation2 + $0x414] sm:$0xf0]  ;;  %v2884_v24 = vld [vmem:[#allocation2 + $0x2f8] sm:$0xf0]  ;;  %v2647_v6 = vor.u32 %v3645_v59, %v2644_v60  ;;  %v3765_v25 = vld [vmem:[#allocation2 + $0x4cc] sm:$0xf] }
  0x9c   :  { %1647 = vmatpush.bf16.msra.mxu0 %v2759_v32  ;;  %v3027_v29 = vor.u32 %v3743_v19, %v3026_v18  ;;  %v3268_v63 = vld [vmem:[#allocation2 + $0x5f8] sm:$0xf0]  ;;  %v3789_v45 = vld [vmem:[#allocation2 + $0x58c] sm:$0xf] }
  0x9d   :  { %1583 = vmatpush.bf16.msra.mxu2 %v2915_v22  ;;  %v3775_v22 = vld [vmem:[#allocation2 + $0x514] sm:$0xf0]  ;;  %v2516_v5 = vld [vmem:[#allocation2 + $0x18] sm:$0xf0]  ;;  %v3713_v51 = vld [vmem:[#allocation2 + $0x32c] sm:$0xf] }
  0x9e   :  { %v3155_v32 = vor.u32 %v3775_v22, %v3154_v20  ;;  %v2964_v8 = vld [vmem:[#allocation2 + $0x398] sm:$0xf0]  ;;  %v3689_v20 = vld [vmem:[#allocation2 + $0x26c] sm:$0xf] }
  0x9f   :  { %1594 = vmatpush.bf16.msra.mxu1 %v3091_v33  ;;  %1608 = vmatpush.bf16.msra.mxu3 %v3219_v39  ;;  %v2887_v33 = vor.u32 %v3705_v23, %v2884_v24  ;;  %v3701_v39 = vld [vmem:[#allocation2 + $0x2cc] sm:$0xf]  ;;  %v2967_v19 = vor.u32 %v3725_v7, %v2964_v8  ;;  %v2948_v24 = vld [vmem:[#allocation2 + $0x378] sm:$0xf0] }
  0xa0   :  { %1648 = vmatpush.bf16.msra.mxu0 %v2743_v49  ;;  %v2871_v49 = vor.u32 %v3701_v39, %v2868_v42  ;;  %v3721_v23 = vld [vmem:[#allocation2 + $0x36c] sm:$0xf]  ;;  %v3108_v42 = vld [vmem:[#allocation2 + $0x4b8] sm:$0xf0] }
  0xa1   :  { %1584 = vmatpush.bf16.msra.mxu2 %v2899_v38  ;;  %v3015_v38 = vor.u32 %v3737_v26, %v3012_v28  ;;  %v3761_v39 = vld [vmem:[#allocation2 + $0x4ac] sm:$0xf]  ;;  %v3220_v46 = vld [vmem:[#allocation2 + $0x598] sm:$0xf0] }
  0xa2   :  { %v3677_v58 = vld [vmem:[#allocation2 + $0x20c] sm:$0xf]  ;;  %v2772_v59 = vld [vmem:[#allocation2 + $0x218] sm:$0xf0] }
  0xa3   :  { %1595 = vmatpush.bf16.msra.mxu1 %v3075_v50  ;;  %1609 = vmatpush.bf16.msra.mxu3 %v3203_v53  ;;  %v2551_v50 = vor.u32 %v3621_v37, %v2548_v43  ;;  %v3697_v53 = vld [vmem:[#allocation2 + $0x2ac] sm:$0xf] }
  0xa4   :  { %1585 = vmatmul.bf16.vlgmr.msra.gmra.mxu2 %v4027_v40  ;;  %1649 = vmatpush.bf16.msra.mxu0 %v2727_v61  ;;  %v2855_v61 = vor.u32 %v3697_v53, %v2852_v54  ;;  %v3717_v37 = vld [vmem:[#allocation2 + $0x34c] sm:$0xf]  ;;  %v3092_v53 = vld [vmem:[#allocation2 + $0x498] sm:$0xf0]  ;;  %v3223_v54 = vor.u32 %v3789_v45, %v3220_v46 }
  0xa5   :  { %1633 = vmatpush.bf16.msrb.mxu2 %v2631_v44  ;;  %v2679_v44 = vor.u32 %v3653_v30, %v2676_v31  ;;  %v3236_v30 = vld [vmem:[#allocation2 + $0x5b8] sm:$0xf0]  ;;  %v2951_v31 = vor.u32 %v3721_v23, %v2948_v24  ;;  %v3745_v23 = vld [vmem:[#allocation2 + $0x42c] sm:$0xf] }
  0xa6   :  { %v3805_v46 = vld [vmem:[#allocation2 + $0x60c] sm:$0xf] }
  0xa7   :  { %1596 = vmatpush.bf16.msra.mxu1 %v3059_v62  ;;  %1610 = vmatpush.bf16.msra.mxu3 %v3187_v1  ;;  %v3801_v62 = vld [vmem:[#allocation2 + $0x5ec] sm:$0xf] }
  0xa8   :  { %1650 = vmatpush.bf16.msra.mxu0 %v2711_v9  ;;  %v3613_v1 = vld [vmem:[#allocation2 + $0xc] sm:$0xf]  ;;  %v3271_v13 = vor.u32 %v3801_v62, %v3268_v63  ;;  %v2900_v63 = vld [vmem:[#allocation2 + $0x318] sm:$0xf0] }
  0xa9   :  { %1634 = vmatpush.bf16.msrb.mxu2 %v2615_v56  ;;  %3290 = vmatmul.msk.bf16.vlgmr.msrb.gmra.mxu0 %vm1335_vm0, %v4064_v11  ;;  %v2663_v56 = vor.u32 %v3649_v47, %v2660_v48  ;;  %v3769_v9 = vld [vmem:[#allocation2 + $0x4ec] sm:$0xf]  ;;  %v2519_v18 = vor.u32 %v3613_v1, %v2516_v5 }
  0xaa   :  { %v3681_v48 = vld [vmem:[#allocation2 + $0x22c] sm:$0xf] }
  0xab   :  { %1597 = vmatpush.bf16.msra.mxu1 %v3043_v10  ;;  %1611 = vmatpush.bf16.msra.mxu3 %v3171_v16  ;;  %v3140_v10 = vld [vmem:[#allocation2 + $0x4f8] sm:$0xf0]  ;;  %v3709_v62 = vld [vmem:[#allocation2 + $0x30c] sm:$0xf] }
  0xac   :  { %1651 = vmatpush.bf16.msra.mxu0 %v2695_v27  ;;  %v3252_v16 = vld [vmem:[#allocation2 + $0x5d8] sm:$0xf0]  ;;  %v3143_v22 = vor.u32 %v3769_v9, %v3140_v10  ;;  %v3781_v5 = vld [vmem:[#allocation2 + $0x54c] sm:$0xf]  ;;  %v2903_v7 = vor.u32 %v3709_v62, %v2900_v63  ;;  %v3310_v63 = vld [vmem:[#allocation4 + $0x20] sm:$0xf] }
  0xad   :  { %1635 = vmatpush.bf16.msrb.mxu2 %v2599_v4  ;;  %v2836_v4 = vld [vmem:[#allocation2 + $0x298] sm:$0xf0]  ;;  %v3255_v26 = vor.u32 %v3797_v15, %v3252_v16  ;;  %v3749_v9 = vld [vmem:[#allocation2 + $0x44c] sm:$0xf]  ;;  %v3342_v15 = vld [vmem:[#allocation4 + $0x60] sm:$0xf] }
  0xae   :  { %v2839_v14 = vor.u32 %v3693_v3, %v2836_v4  ;;  %v3124_v27 = vld [vmem:[#allocation2 + $0x4d8] sm:$0xf0]  ;;  %v3823_v3 = vld [vmem:[#allocation4 + $0x74] sm:$0xf0]  ;;  %v2775_v4 = vor.u32 %v3677_v58, %v2772_v59  ;;  %v3821_v16 = vld [vmem:[#allocation4 + $0x64] sm:$0xf0] }
  0xaf   :  { %1598 = vmatpush.bf16.msra.mxu1 %v3027_v29  ;;  %1612 = vmatpush.bf16.msra.mxu3 %v3155_v32  ;;  %v3793_v29 = vld [vmem:[#allocation2 + $0x5ac] sm:$0xf]  ;;  %v3343_v24 = vor.u32 %v3821_v16, %v3342_v15  ;;  %v3835_v58 = vld [vmem:[#allocation4 + $0xd4] sm:$0xf0] }
  0xb0   :  { %1652 = vmatpush.bf16.msra.mxu0 %v2679_v44  ;;  %v3685_v32 = vld [vmem:[#allocation2 + $0x24c] sm:$0xf]  ;;  %v3239_v43 = vor.u32 %v3793_v29, %v3236_v30  ;;  %v3819_v29 = vld [vmem:[#allocation4 + $0x54] sm:$0xf0] }
  0xb1   :  { %1636 = vmatpush.bf16.msrb.mxu2 %v2583_v21  ;;  %v2820_v21 = vld [vmem:[#allocation2 + $0x278] sm:$0xf0]  ;;  %v3773_v30 = vld [vmem:[#allocation2 + $0x50c] sm:$0xf]  ;;  %v3831_v15 = vld [vmem:[#allocation4 + $0xb4] sm:$0xf0] }
  0xb2   :  { %1599 = vmatmul.bf16.vlgmr.msra.gmra.mxu1 %v4067_v12  ;;  %1613 = vmatmul.bf16.vlgmr.msra.gmra.mxu3 %v4070_v17  ;;  %v2823_v28 = vor.u32 %v3689_v20, %v2820_v21  ;;  %v4096_v20 = vld [vmem:[%s4171_s2] sm:$0xf] }
  0xb3   :  { %1661 = vmatpush.bf16.msrb.mxu1 %v2887_v33  ;;  %1675 = vmatpush.bf16.msrb.mxu3 %v3015_v38  ;;  %v2804_v33 = vld [vmem:[#allocation2 + $0x258] sm:$0xf0] }
  0xb4   :  { %1653 = vmatpush.bf16.msra.mxu0 %v2663_v56  ;;  %v2932_v38 = vld [vmem:[#allocation2 + $0x358] sm:$0xf0]  ;;  %v2807_v44 = vor.u32 %v3685_v32, %v2804_v33  ;;  %v3785_v56 = vld [vmem:[#allocation2 + $0x56c] sm:$0xf]  ;;  %v347_v32 = vperm.slane %v4096_v20, 0 }
  0xb5   :  { %1637 = vmatpush.bf16.msrb.mxu2 %v2567_v36  ;;  %v3127_v36 = vor.u32 %v3765_v25, %v3124_v27  ;;  %v2935_v47 = vor.u32 %v3717_v37, %v2932_v38  ;;  %v3044_v27 = vld [vmem:[#allocation2 + $0x438] sm:$0xf0] }
  0xb6   :  { %v3047_v33 = vor.u32 %v3745_v23, %v3044_v27  ;;  %v3028_v37 = vld [vmem:[#allocation2 + $0x418] sm:$0xf0]  ;;  %v3822_v23 = vld [vmem:[#allocation4 + $0x74] sm:$0xf] }
  0xb7   :  { %1662 = vmatpush.bf16.msrb.mxu1 %v2871_v49  ;;  %1676 = vmatpush.bf16.msrb.mxu3 %v2999_v52  ;;  %v2788_v49 = vld [vmem:[#allocation2 + $0x238] sm:$0xf0]  ;;  %v3757_v52 = vld [vmem:[#allocation2 + $0x48c] sm:$0xf] }
  0xb8   :  { %1654 = vmatpush.bf16.msra.mxu0 %v2647_v6  ;;  %v2791_v55 = vor.u32 %v3681_v48, %v2788_v49  ;;  %v3095_v60 = vor.u32 %v3757_v52, %v3092_v53  ;;  %v3188_v6 = vld [vmem:[#allocation2 + $0x558] sm:$0xf0]  ;;  %v3406_v48 = vld [vmem:[#allocation4 + $0xe0] sm:$0xf]  ;;  %v3837_v49 = vld [vmem:[#allocation4 + $0xe4] sm:$0xf0] }
  0xb9   :  { %1638 = vmatpush.bf16.msrb.mxu2 %v2551_v50  ;;  %v3111_v50 = vor.u32 %v3761_v39, %v3108_v42  ;;  %v3326_v39 = vld [vmem:[#allocation4 + $0x40] sm:$0xf]  ;;  %v3318_v53 = vld [vmem:[#allocation4 + $0x30] sm:$0xf] }
  0xbb   :  { %1663 = vmatpush.bf16.msrb.mxu1 %v2855_v61  ;;  %1677 = vmatpush.bf16.msrb.mxu3 %v2983_v2  ;;  %v3753_v61 = vld [vmem:[#allocation2 + $0x46c] sm:$0xf]  ;;  %v3350_v2 = vld [vmem:[#allocation4 + $0x70] sm:$0xf] }
  0xbc   :  { %1703 = vmatpush.bf16.msrb.mxu0 %v3271_v13  ;;  %v3351_v10 = vor.u32 %v3823_v3, %v3350_v2  ;;  %v3060_v13 = vld [vmem:[#allocation2 + $0x458] sm:$0xf0]  ;;  %v3390_v2 = vld [vmem:[#allocation4 + $0xc0] sm:$0xf]  ;;  %v3833_v3 = vld [vmem:[#allocation4 + $0xc4] sm:$0xf0] }
  0xbd   :  { %1639 = vmatpush.bf16.msrb.mxu2 %v2535_v0  ;;  %1655 = vmatmul.bf16.vlgmr.msra.gmra.mxu0 %v4029_v41  ;;  %v2916_v41 = vld [vmem:[#allocation2 + $0x338] sm:$0xf0] }
  0xbe   :  { %v2919_v57 = vor.u32 %v3713_v51, %v2916_v41  ;;  %v3076_v0 = vld [vmem:[#allocation2 + $0x478] sm:$0xf0] }
  0xbf   :  { %1664 = vmatpush.bf16.msrb.mxu1 %v2839_v14  ;;  %1678 = vmatpush.bf16.msrb.mxu3 %v2967_v19  ;;  %v3079_v8 = vor.u32 %v3753_v61, %v3076_v0  ;;  %v3191_v14 = vor.u32 %v3781_v5, %v3188_v6  ;;  %v3172_v19 = vld [vmem:[#allocation2 + $0x538] sm:$0xf0]  ;;  %v3813_v0 = vld [vmem:[#allocation4 + $0x24] sm:$0xf0] }
  0xc0   :  { %1704 = vmatpush.bf16.msrb.mxu0 %v3255_v26  ;;  %v3311_v5 = vor.u32 %v3813_v0, %v3310_v63  ;;  %v3408_v0 = vld [vmem:[#allocation4 + $0xe8] sm:$0xf0] }
  0xc1   :  { %1640 = vmatpush.bf16.msrb.mxu2 %v2519_v18  ;;  %v3777_v18 = vld [vmem:[#allocation2 + $0x52c] sm:$0xf]  ;;  %v1348_v21 = vpop.f32.mrf.mxu0 }
  0xc2   :  { %v3175_v26 = vor.u32 %v3777_v18, %v3172_v19  ;;  %v1349_v41 = vadd.f32 %v1348_v21, %v347_v32  ;;  %v3809_v21 = vld [vmem:[#allocation4 + $0x4] sm:$0xf0] }
  0xc3   :  { %1665 = vmatpush.bf16.msrb.mxu1 %v2823_v28  ;;  %1679 = vmatpush.bf16.msrb.mxu3 %v2951_v31  ;;  %v1362_v25 = vpop.f32.mrf.mxu1  ;;  %v3334_v28 = vld [vmem:[#allocation4 + $0x50] sm:$0xf]  ;;  %v3156_v31 = vld [vmem:[#allocation2 + $0x518] sm:$0xf0] }
  0xc4   :  { %1641 = vmatmul.bf16.vlgmr.msrb.gmra.mxu2 %v4025_v35  ;;  %1705 = vmatpush.bf16.msrb.mxu0 %v3239_v43  ;;  %v3204_v35 = vld [vmem:[#allocation2 + $0x578] sm:$0xf0]  ;;  %v3335_v38 = vor.u32 %v3819_v29, %v3334_v28  ;;  %v3159_v42 = vor.u32 %v3773_v30, %v3156_v31  ;;  %v3414_v43 = vld [vmem:[#allocation4 + $0xf0] sm:$0xf]  ;;  %v1363_v61 = vadd.f32 %v1362_v25, %v1349_v41  ;;  %v3829_v28 = vld [vmem:[#allocation4 + $0xa4] sm:$0xf0] }
  0xc5   :  { %1689 = vmatpush.bf16.msra.mxu2 %v3143_v22  ;;  %v3207_v1 = vor.u32 %v3785_v56, %v3204_v35  ;;  %v3063_v22 = vor.u32 %v3749_v9, %v3060_v13  ;;  %v3407_v56 = vor.u32 %v3837_v49, %v3406_v48  ;;  %v3811_v9 = vld [vmem:[#allocation4 + $0x14] sm:$0xf0]  ;;  %v3391_v13 = vor.u32 %v3833_v3, %v3390_v2  ;;  %v3825_v41 = vld [vmem:[#allocation4 + $0x84] sm:$0xf0]  ;;  %v3320_v2 = vld [vmem:[#allocation4 + $0x38] sm:$0xf0] }
  0xc7   :  { %1666 = vmatpush.bf16.msrb.mxu1 %v2807_v44  ;;  %1680 = vmatpush.bf16.msrb.mxu3 %v2935_v47  ;;  %v3839_v44 = vld [vmem:[#allocation4 + $0xf4] sm:$0xf0]  ;;  %v1376_v45 = vpop.f32.mrf.mxu2  ;;  %v3284_v47 = vld [vmem:[#allocation2 + $0x618] sm:$0xf0] }
  0xc8   :  { %1706 = vmatpush.bf16.msrb.mxu0 %v3223_v54  ;;  %v3287_v52 = vor.u32 %v3805_v46, %v3284_v47  ;;  %v3815_v54 = vld [vmem:[#allocation4 + $0x34] sm:$0xf0]  ;;  %v1390_v59 = vpop.f32.mrf.mxu3  ;;  %v1377_v6 = vadd.f32 %v1376_v45, %v1363_v61  ;;  %v3818_v47 = vld [vmem:[#allocation4 + $0x54] sm:$0xf] }
  0xc9   :  { %1690 = vmatpush.bf16.msra.mxu2 %v3127_v36  ;;  %v3741_v36 = vld [vmem:[#allocation2 + $0x40c] sm:$0xf]  ;;  %v3827_v46 = vld [vmem:[#allocation4 + $0x94] sm:$0xf0] }
  0xca   :  { %v1391_v18 = vadd.f32 %v1390_v59, %v1377_v6 }
  0xcb   :  { %1667 = vmatpush.bf16.msrb.mxu1 %v2791_v55  ;;  %1681 = vmatpush.bf16.msrb.mxu3 %v2919_v57  ;;  %v1350_v55 = vpop.f32.mrf.mxu0  ;;  %v1364_v35 = vpop.f32.mrf.mxu1  ;;  %v3398_v57 = vld [vmem:[#allocation4 + $0xd0] sm:$0xf] }
  0xcc   :  { %1707 = vmatpush.bf16.msrb.mxu0 %v3207_v1  ;;  %v1351_v62 = vadd.f32 %v1350_v55, %v347_v32  ;;  %v3399_v1 = vor.u32 %v3835_v58, %v3398_v57  ;;  %v3328_v57 = vld [vmem:[#allocation4 + $0x48] sm:$0xf0] }
  0xcd   :  { %1691 = vmatpush.bf16.msra.mxu2 %v3111_v50  ;;  %v3031_v50 = vor.u32 %v3741_v36, %v3028_v37  ;;  %v3820_v36 = vld [vmem:[#allocation4 + $0x64] sm:$0xf]  ;;  %v3344_v37 = vld [vmem:[#allocation4 + $0x68] sm:$0xf0] }
  0xce   :  { %v3347_v45 = vor.u32 %v3820_v36, %v3344_v37 }
  0xcf   :  { %1668 = vmatpush.bf16.msrb.mxu1 %v2775_v4  ;;  %1682 = vmatpush.bf16.msrb.mxu3 %v2903_v7  ;;  %v1378_v4 = vpop.f32.mrf.mxu2  ;;  %v1365_v7 = vadd.f32 %v1364_v35, %v1351_v62  ;;  %v3816_v35 = vld [vmem:[#allocation4 + $0x44] sm:$0xf] }
  0xd0   :  { %1708 = vmatpush.bf16.msrb.mxu0 %v3191_v14  ;;  %v3836_v62 = vld [vmem:[#allocation4 + $0xe4] sm:$0xf] }
  0xd1   :  { %1692 = vmatpush.bf16.msra.mxu2 %v3095_v60  ;;  %v3319_v60 = vor.u32 %v3815_v54, %v3318_v53  ;;  %v1379_v19 = vadd.f32 %v1378_v4, %v1365_v7  ;;  %v3838_v53 = vld [vmem:[#allocation4 + $0xf4] sm:$0xf]  ;;  %v3416_v54 = vld [vmem:[#allocation4 + $0xf8] sm:$0xf0]  ;;  %v3411_v4 = vor.u32 %v3836_v62, %v3408_v0  ;;  %v3454_v62 = vld [vmem:[#allocation4 + $0x140] sm:$0xf] }
  0xd2   :  { %1669 = vmatmul.bf16.vlgmr.msrb.gmra.mxu1 %v4023_v34  ;;  %1683 = vmatmul.bf16.vlgmr.msrb.gmra.mxu3 %v4027_v40  ;;  %v3817_v34 = vld [vmem:[#allocation4 + $0x44] sm:$0xf0]  ;;  %v3415_v40 = vor.u32 %v3839_v44, %v3414_v43  ;;  %v3366_v43 = vld [vmem:[#allocation4 + $0x90] sm:$0xf]  ;;  %v3419_v61 = vor.u32 %v3838_v53, %v3416_v54 }
  0xd3   :  { %2133 = vmatpush.bf16.msra.mxu3 %v3351_v10  ;;  %v3327_v51 = vor.u32 %v3817_v34, %v3326_v39  ;;  %v3367_v48 = vor.u32 %v3827_v46, %v3366_v43  ;;  %v3828_v46 = vld [vmem:[#allocation4 + $0xa4] sm:$0xf]  ;;  %v3462_v54 = vld [vmem:[#allocation4 + $0x150] sm:$0xf] }
  0xd4   :  { %1709 = vmatpush.bf16.msrb.mxu0 %v3175_v26  ;;  %2147 = vmatpush.bf16.msra.mxu1 %v3415_v40  ;;  %v3374_v26 = vld [vmem:[#allocation4 + $0xa0] sm:$0xf]  ;;  %v3336_v40 = vld [vmem:[#allocation4 + $0x58] sm:$0xf0] }
  0xd5   :  { %1693 = vmatpush.bf16.msra.mxu2 %v3079_v8  ;;  %v3302_v8 = vld [vmem:[#allocation4 + $0x10] sm:$0xf] }
  0xd6   :  { %v3303_v16 = vor.u32 %v3811_v9, %v3302_v8  ;;  %v3812_v9 = vld [vmem:[#allocation4 + $0x24] sm:$0xf] }
  0xd7   :  { %2134 = vmatpush.bf16.msra.mxu3 %v3343_v24  ;;  %v3352_v24 = vld [vmem:[#allocation4 + $0x78] sm:$0xf0] }
  0xd8   :  { %1710 = vmatpush.bf16.msrb.mxu0 %v3159_v42  ;;  %2148 = vmatpush.bf16.msra.mxu1 %v3407_v56  ;;  %v3355_v32 = vor.u32 %v3822_v23, %v3352_v24  ;;  %v3339_v56 = vor.u32 %v3818_v47, %v3336_v40  ;;  %v3304_v23 = vld [vmem:[#allocation4 + $0x18] sm:$0xf0]  ;;  %v3376_v47 = vld [vmem:[#allocation4 + $0xa8] sm:$0xf0] }
  0xd9   :  { %1694 = vmatpush.bf16.msra.mxu2 %v3063_v22  ;;  %v1404_v10 = vpop.f32.mrf.mxu0  ;;  %v1418_v14 = vpop.f32.mrf.mxu1 }
  0xda   :  { %v1392_v22 = vpop.f32.mrf.mxu3  ;;  %v1405_v27 = vadd.f32 %v1404_v10, %v1391_v18  ;;  %v3312_v10 = vld [vmem:[#allocation4 + $0x28] sm:$0xf0] }
  0xdb   :  { %2135 = vmatpush.bf16.msra.mxu3 %v3335_v38  ;;  %1711 = vmatmul.bf16.vlgmr.msrb.gmra.mxu0 %v4070_v17  ;;  %v3382_v17 = vld [vmem:[#allocation4 + $0xb0] sm:$0xf]  ;;  %v1393_v31 = vadd.f32 %v1392_v22, %v1379_v19  ;;  %v3375_v38 = vor.u32 %v3829_v28, %v3374_v26  ;;  %v3392_v18 = vld [vmem:[#allocation4 + $0xc8] sm:$0xf0]  ;;  %v3315_v19 = vor.u32 %v3812_v9, %v3312_v10  ;;  %v3810_v22 = vld [vmem:[#allocation4 + $0x14] sm:$0xf] }
  0xdc   :  { %2149 = vmatpush.bf16.msra.mxu1 %v3399_v1  ;;  %v3383_v25 = vor.u32 %v3831_v15, %v3382_v17  ;;  %v1419_v39 = vadd.f32 %v1418_v14, %v1405_v27  ;;  %v3814_v1 = vld [vmem:[#allocation4 + $0x34] sm:$0xf]  ;;  %v3400_v14 = vld [vmem:[#allocation4 + $0xd8] sm:$0xf0]  ;;  %v3470_v28 = vld [vmem:[#allocation4 + $0x160] sm:$0xf] }
  0xdd   :  { %1695 = vmatpush.bf16.msra.mxu2 %v3047_v33  ;;  %v1432_v29 = vpop.f32.mrf.mxu2  ;;  %v3323_v8 = vor.u32 %v3814_v1, %v3320_v2  ;;  %v3845_v9 = vld [vmem:[#allocation4 + $0x124] sm:$0xf0] }
  0xde   :  { %v1433_v49 = vadd.f32 %v1432_v29, %v1419_v39  ;;  %v3853_v29 = vld [vmem:[#allocation4 + $0x164] sm:$0xf0]  ;;  %v3808_v39 = vld [vmem:[#allocation4 + $0x4] sm:$0xf] }
  0xdf   :  { %2136 = vmatpush.bf16.msra.mxu3 %v3327_v51  ;;  %v3358_v51 = vld [vmem:[#allocation4 + $0x80] sm:$0xf]  ;;  %v3471_v36 = vor.u32 %v3853_v29, %v3470_v28  ;;  %v3852_v29 = vld [vmem:[#allocation4 + $0x164] sm:$0xf] }
  0xe0   :  { %2150 = vmatpush.bf16.msra.mxu1 %v3391_v13  ;;  %v3359_v58 = vor.u32 %v3825_v41, %v3358_v51  ;;  %v1731_v59 = vmax.f32 %v1433_v49, 0.0  ;;  %v3834_v13 = vld [vmem:[#allocation4 + $0xd4] sm:$0xf]  ;;  %v3368_v41 = vld [vmem:[#allocation4 + $0x98] sm:$0xf0] }
  0xe1   :  { %1696 = vmatpush.bf16.msra.mxu2 %v3031_v50  ;;  %v1406_v33 = vpop.f32.mrf.mxu0  ;;  %v1420_v34 = vpop.f32.mrf.mxu1  ;;  %v3403_v17 = vor.u32 %v3834_v13, %v3400_v14  ;;  %v3826_v51 = vld [vmem:[#allocation4 + $0x94] sm:$0xf] }
  0xe2   :  { %v1407_v42 = vadd.f32 %v1406_v33, %v1393_v31  ;;  %v1446_v50 = vpop.f32.mrf.mxu3  ;;  %v3384_v33 = vld [vmem:[#allocation4 + $0xb8] sm:$0xf0] }
  0xe3   :  { %2137 = vmatpush.bf16.msra.mxu3 %v3319_v60 }
  0xe4   :  { %1697 = vmatmul.bf16.vlgmr.msra.gmra.mxu2 %v4067_v12  ;;  %v3294_v12 = vld [vmem:[#allocation4] sm:$0xf]  ;;  %2151 = vmatpush.bf16.msra.mxu1 %v3383_v25  ;;  %v1421_v44 = vadd.f32 %v1420_v34, %v1407_v42  ;;  %v3296_v42 = vld [vmem:[#allocation4 + $0x8] sm:$0xf0] }
  0xe5   :  { %1724 = vmatpush.bf16.msrb.mxu2 %v3287_v52  ;;  %v3295_v30 = vor.u32 %v3809_v21, %v3294_v12  ;;  %v1434_v52 = vpop.f32.mrf.mxu2  ;;  %v3478_v12 = vld [vmem:[#allocation4 + $0x170] sm:$0xf]  ;;  %v3855_v21 = vld [vmem:[#allocation4 + $0x174] sm:$0xf0]  ;;  %v3299_v40 = vor.u32 %v3808_v39, %v3296_v42  ;;  %v3848_v39 = vld [vmem:[#allocation4 + $0x144] sm:$0xf] }
  0xe6   :  { %v1435_v55 = vadd.f32 %v1434_v52, %v1421_v44  ;;  %v3479_v24 = vor.u32 %v3855_v21, %v3478_v12  ;;  %v349_v42 = vperm.slane %v4096_v20, 2 }
  0xe7   :  { %2138 = vmatpush.bf16.msra.mxu3 %v3311_v5  ;;  %v348_v5 = vperm.slane %v4096_v20, 1 }
  0xe8   :  { %2152 = vmatpush.bf16.msra.mxu1 %v3375_v38  ;;  %v1735_v60 = vmax.f32 %v1435_v55, 0.0  ;;  %v3307_v38 = vor.u32 %v3810_v22, %v3304_v23  ;;  %v3851_v55 = vld [vmem:[#allocation4 + $0x154] sm:$0xf0]  ;;  %v3422_v23 = vld [vmem:[#allocation4 + $0x100] sm:$0xf] }
  0xe9   :  { %v1447_v15 = vadd.f32 %v1446_v50, %v348_v5  ;;  %2161 = vmatpush.bf16.msra.mxu2 %v3479_v24  ;;  %v3841_v24 = vld [vmem:[#allocation4 + $0x104] sm:$0xf0] }
  0xea   :  { %v4105_v63 = vpack.c.bf16 %v1735_v60, %v1731_v59  ;;  %v1448_v7 = vpop.f32.mrf.mxu3 }
  0xeb   :  { %2139 = vmatpush.bf16.msra.mxu3 %v3303_v16  ;;  %v3832_v16 = vld [vmem:[#allocation4 + $0xc4] sm:$0xf]  ;;  %v1449_v31 = vadd.f32 %v1448_v7, %v348_v5  ;;  %v3446_v5 = vld [vmem:[#allocation4 + $0x130] sm:$0xf] }
  0xec   :  { %2153 = vmatpush.bf16.msra.mxu1 %v3367_v48  ;;  %v3395_v26 = vor.u32 %v3832_v16, %v3392_v18  ;;  %v3379_v48 = vor.u32 %v3828_v46, %v3376_v47  ;;  %v3430_v16 = vld [vmem:[#allocation4 + $0x110] sm:$0xf]  ;;  %v3843_v18 = vld [vmem:[#allocation4 + $0x114] sm:$0xf0] }
  0xed   :  { %v1460_v6 = vpop.f32.mrf.mxu2  ;;  %2162 = vmatpush.bf16.msra.mxu2 %v3471_v36  ;;  %v3431_v21 = vor.u32 %v3843_v18, %v3430_v16 }
  0xee   :  { %v1474_v3 = vpop.f32.mrf.mxu0 }
  0xef   :  { %2140 = vmatpush.bf16.msra.mxu3 %v3295_v30  ;;  %v1488_v25 = vpop.f32.mrf.mxu1  ;;  %v1461_v30 = vadd.f32 %v1460_v6, %v1447_v15  ;;  %v3847_v6 = vld [vmem:[#allocation4 + $0x134] sm:$0xf0] }
  0xf0   :  { %2154 = vmatpush.bf16.msra.mxu1 %v3359_v58  ;;  %v3463_v58 = vor.u32 %v3851_v55, %v3462_v54  ;;  %v3447_v7 = vor.u32 %v3847_v6, %v3446_v5  ;;  %v3871_v54 = vld [vmem:[#allocation4 + $0x1f4] sm:$0xf0]  ;;  %v3844_v55 = vld [vmem:[#allocation4 + $0x124] sm:$0xf] }
  0xf1   :  { %v1475_v44 = vadd.f32 %v1474_v3, %v1461_v30  ;;  %v3472_v30 = vld [vmem:[#allocation4 + $0x168] sm:$0xf0] }
  0xf2   :  { %2141 = vmatmul.bf16.vlgmr.msra.gmra.mxu3 %v4105_v63  ;;  %2163 = vmatpush.bf16.msra.mxu2 %v3463_v58  ;;  %v3534_v58 = vld [vmem:[#allocation4 + $0x1e0] sm:$0xf] }
  0xf3   :  { %2189 = vmatpush.bf16.msrb.mxu3 %v3355_v32  ;;  %v3830_v32 = vld [vmem:[#allocation4 + $0xb4] sm:$0xf]  ;;  %v1489_v49 = vadd.f32 %v1488_v25, %v1475_v44 }
  0xf4   :  { %3291 = vmatmul.msk.bf16.vlgmr.msrb.gmra.mxu2 %vm1335_vm0, %v4064_v11  ;;  %v3331_v11 = vor.u32 %v3816_v35, %v3328_v57  ;;  %2203 = vmatpush.bf16.msrb.mxu1 %v3419_v61  ;;  %v3387_v43 = vor.u32 %v3830_v32, %v3384_v33  ;;  %v3371_v35 = vor.u32 %v3826_v51, %v3368_v41  ;;  %v3824_v57 = vld [vmem:[#allocation4 + $0x84] sm:$0xf]  ;;  %v3360_v61 = vld [vmem:[#allocation4 + $0x88] sm:$0xf0]  ;;  %v3854_v25 = vld [vmem:[#allocation4 + $0x174] sm:$0xf] }
  0xf5   :  { %v1462_v37 = vpop.f32.mrf.mxu2  ;;  %v1502_v34 = vpop.f32.mrf.mxu3  ;;  %v3363_v2 = vor.u32 %v3824_v57, %v3360_v61  ;;  %v3475_v32 = vor.u32 %v3852_v29, %v3472_v30  ;;  %v3542_v51 = vld [vmem:[#allocation4 + $0x1f0] sm:$0xf] }
  0xf6   :  { %v1476_v27 = vpop.f32.mrf.mxu0  ;;  %v1503_v59 = vadd.f32 %v1502_v34, %v1489_v49  ;;  %v3846_v49 = vld [vmem:[#allocation4 + $0x134] sm:$0xf]  ;;  %v3543_v57 = vor.u32 %v3871_v54, %v3542_v51  ;;  %v3510_v30 = vld [vmem:[#allocation4 + $0x1b0] sm:$0xf]  ;;  %v3528_v54 = vld [vmem:[#allocation4 + $0x1d8] sm:$0xf0] }
  0xf7   :  { %2190 = vmatpush.bf16.msrb.mxu3 %v3347_v45  ;;  %v1463_v45 = vadd.f32 %v1462_v37, %v1449_v31  ;;  %v1490_v52 = vpop.f32.mrf.mxu1  ;;  %v3850_v37 = vld [vmem:[#allocation4 + $0x154] sm:$0xf] }
  0xf8   :  { %2204 = vmatpush.bf16.msrb.mxu1 %v3411_v4  ;;  %2175 = vmatpush.bf16.msra.mxu0 %v3543_v57 }
  0xf9   :  { %v1477_v50 = vadd.f32 %v1476_v27, %v1463_v45  ;;  %v3423_v27 = vor.u32 %v3841_v24, %v3422_v23 }
  0xfb   :  { %2191 = vmatpush.bf16.msrb.mxu3 %v3339_v56  ;;  %v1491_v60 = vadd.f32 %v1490_v52, %v1477_v50  ;;  %v3448_v50 = vld [vmem:[#allocation4 + $0x138] sm:$0xf0] }
  0xfc   :  { %2205 = vmatpush.bf16.msrb.mxu1 %v3403_v17 }
  0xfd   :  { %v1504_v0 = vpop.f32.mrf.mxu3 }
  0xfe   :  { %v1530_v53 = vpop.f32.mrf.mxu0  ;;  %v1505_v4 = vadd.f32 %v1504_v0, %v1491_v60 }
  0xff   :  { %2192 = vmatpush.bf16.msrb.mxu3 %v3331_v11  ;;  %v3849_v11 = vld [vmem:[#allocation4 + $0x144] sm:$0xf0] }
 0x100   :  { %2206 = vmatpush.bf16.msrb.mxu1 %v3395_v26  ;;  %v3455_v1 = vor.u32 %v3849_v11, %v3454_v62  ;;  %v3480_v26 = vld [vmem:[#allocation4 + $0x178] sm:$0xf0]  ;;  %v3842_v62 = vld [vmem:[#allocation4 + $0x114] sm:$0xf] }
 0x101   :  { %v3483_v28 = vor.u32 %v3854_v25, %v3480_v26  ;;  %v3432_v11 = vld [vmem:[#allocation4 + $0x118] sm:$0xf0] }
 0x102   :  { %2164 = vmatpush.bf16.msra.mxu2 %v3455_v1 }
 0x103   :  { %2193 = vmatpush.bf16.msrb.mxu3 %v3323_v8  ;;  %v3438_v8 = vld [vmem:[#allocation4 + $0x120] sm:$0xf] }
 0x104   :  { %2207 = vmatpush.bf16.msrb.mxu1 %v3387_v43  ;;  %v3439_v17 = vor.u32 %v3845_v9, %v3438_v8  ;;  %v3456_v43 = vld [vmem:[#allocation4 + $0x148] sm:$0xf0]  ;;  %v3840_v8 = vld [vmem:[#allocation4 + $0x104] sm:$0xf] }
 0x105   :  { %v3459_v45 = vor.u32 %v3848_v39, %v3456_v43  ;;  %v3424_v9 = vld [vmem:[#allocation4 + $0x108] sm:$0xf0]  ;;  %v3494_v39 = vld [vmem:[#allocation4 + $0x190] sm:$0xf] }
 0x106   :  { %v1532_v13 = vpop.f32.mrf.mxu0  ;;  %2165 = vmatpush.bf16.msra.mxu2 %v3447_v7  ;;  %v3427_v16 = vor.u32 %v3840_v8, %v3424_v9 }
 0x107   :  { %2194 = vmatpush.bf16.msrb.mxu3 %v3315_v19  ;;  %v1516_v56 = vpop.f32.mrf.mxu2 }
 0x108   :  { %2208 = vmatpush.bf16.msrb.mxu1 %v3379_v48  ;;  %v1517_v3 = vadd.f32 %v1516_v56, %v1503_v59  ;;  %v3440_v56 = vld [vmem:[#allocation4 + $0x128] sm:$0xf0]  ;;  %v3869_v59 = vld [vmem:[#allocation4 + $0x1e4] sm:$0xf0] }
 0x109   :  { %v3443_v60 = vor.u32 %v3844_v55, %v3440_v56  ;;  %v3535_v61 = vor.u32 %v3869_v59, %v3534_v58  ;;  %v3864_v56 = vld [vmem:[#allocation4 + $0x1c4] sm:$0xf]  ;;  %v3862_v58 = vld [vmem:[#allocation4 + $0x1b4] sm:$0xf]  ;;  %v3512_v59 = vld [vmem:[#allocation4 + $0x1b8] sm:$0xf0] }
 0x10a   :  { %2166 = vmatpush.bf16.msra.mxu2 %v3439_v17 }
 0x10b   :  { %2195 = vmatpush.bf16.msrb.mxu3 %v3307_v38  ;;  %v3464_v38 = vld [vmem:[#allocation4 + $0x158] sm:$0xf0]  ;;  %2176 = vmatpush.bf16.msra.mxu0 %v3535_v61 }
 0x10c   :  { %2209 = vmatpush.bf16.msrb.mxu1 %v3371_v35  ;;  %v3467_v34 = vor.u32 %v3850_v37, %v3464_v38 }
 0x10e   :  { %2167 = vmatpush.bf16.msra.mxu2 %v3431_v21 }
 0x10f   :  { %2196 = vmatpush.bf16.msrb.mxu3 %v3299_v40  ;;  %v1518_v10 = vpop.f32.mrf.mxu2  ;;  %v1544_v31 = vpop.f32.mrf.mxu1 }
 0x110   :  { %2210 = vmatpush.bf16.msrb.mxu1 %v3363_v2  ;;  %v1519_v14 = vadd.f32 %v1518_v10, %v1505_v4  ;;  %v1545_v46 = vadd.f32 %v1544_v31, %v349_v42  ;;  %v3526_v2 = vld [vmem:[#allocation4 + $0x1d0] sm:$0xf]  ;;  %v3435_v4 = vor.u32 %v3842_v62, %v3432_v11  ;;  %v3863_v31 = vld [vmem:[#allocation4 + $0x1b4] sm:$0xf0]  ;;  %v3515_v62 = vor.u32 %v3862_v58, %v3512_v59 }
 0x111   :  { %v350_v11 = vperm.slane %v4096_v20, 3 }
 0x112   :  { %2197 = vmatmul.bf16.vlgmr.msrb.gmra.mxu3 %v4105_v63  ;;  %v1531_v63 = vadd.f32 %v1530_v53, %v1517_v3  ;;  %v1533_v15 = vadd.f32 %v1532_v13, %v1519_v14  ;;  %2168 = vmatpush.bf16.msra.mxu2 %v3423_v27  ;;  %v3451_v53 = vor.u32 %v3846_v49, %v3448_v50  ;;  %v3867_v3 = vld [vmem:[#allocation4 + $0x1d4] sm:$0xf0]  ;;  %v3865_v14 = vld [vmem:[#allocation4 + $0x1c4] sm:$0xf0]  ;;  %v3868_v49 = vld [vmem:[#allocation4 + $0x1e4] sm:$0xf] }
 0x113   :  { %v3527_v7 = vor.u32 %v3867_v3, %v3526_v2  ;;  %v3536_v50 = vld [vmem:[#allocation4 + $0x1e8] sm:$0xf0] }
 0x114   :  { %v1732_v19 = vmax.f32 %v1531_v63, 0.0  ;;  %v1736_v12 = vmax.f32 %v1533_v15, 0.0  ;;  %v3518_v63 = vld [vmem:[#allocation4 + $0x1c0] sm:$0xf]  ;;  %v3539_v51 = vor.u32 %v3868_v49, %v3536_v50  ;;  %v3883_v49 = vld [vmem:[%s4174_s5 + $0x58] sm:$0xff] }
 0x115   :  { %v1558_v36 = vpop.f32.mrf.mxu3  ;;  %2177 = vmatpush.bf16.msra.mxu0 %v3527_v7  ;;  %v3496_v7 = vld [vmem:[#allocation4 + $0x198] sm:$0xf0] }
 0x116   :  { %v1740_v22 = vpack.c.bf16 %v1736_v12, %v1732_v19  ;;  %2217 = vmatpush.bf16.msrb.mxu2 %v3483_v28  ;;  %v1572_v33 = vpop.f32.mrf.mxu0  ;;  %v1559_v41 = vadd.f32 %v1558_v36, %v1545_v46  ;;  %v3519_v19 = vor.u32 %v3865_v14, %v3518_v63  ;;  %v3861_v36 = vld [vmem:[#allocation4 + $0x1a4] sm:$0xf0]  ;;  %v3856_v63 = vld [vmem:[#allocation4 + $0x184] sm:$0xf]  ;;  %v3488_v14 = vld [vmem:[#allocation4 + $0x188] sm:$0xf0] }
 0x117   :  { %v1546_v44 = vpop.f32.mrf.mxu1 }
 0x118   :  { %2155 = vmatmul.bf16.vlgmr.msra.gmra.mxu1 %v1740_v22  ;;  %v1547_v52 = vadd.f32 %v1546_v44, %v349_v42  ;;  %v1573_v0 = vadd.f32 %v1572_v33, %v1559_v41  ;;  %v3502_v33 = vld [vmem:[#allocation4 + $0x1a0] sm:$0xf]  ;;  %v3859_v42 = vld [vmem:[#allocation4 + $0x194] sm:$0xf0]  ;;  %v3857_v44 = vld [vmem:[#allocation4 + $0x184] sm:$0xf0] }
 0x119   :  { %2178 = vmatpush.bf16.msra.mxu0 %v3519_v19  ;;  %v3503_v38 = vor.u32 %v3861_v36, %v3502_v33  ;;  %v3495_v43 = vor.u32 %v3859_v42, %v3494_v39  ;;  %v3491_v19 = vor.u32 %v3856_v63, %v3488_v14  ;;  %v3877_v39 = vld [vmem:[%s4174_s5 + $0x28] sm:$0xff]  ;;  %v3876_v42 = vld [vmem:[%s4174_s5 + $0x20] sm:$0xff] }
 0x11a   :  { %2218 = vmatpush.bf16.msrb.mxu2 %v3475_v32  ;;  %v3511_v32 = vor.u32 %v3863_v31, %v3510_v30 }
 0x11d   :  { %v1560_v48 = vpop.f32.mrf.mxu3  ;;  %2179 = vmatpush.bf16.msra.mxu0 %v3511_v32 }
 0x11e   :  { %2219 = vmatpush.bf16.msrb.mxu2 %v3467_v34  ;;  %v1574_v47 = vpop.f32.mrf.mxu0  ;;  %v1561_v1 = vadd.f32 %v1560_v48, %v1547_v52  ;;  %v3486_v34 = vld [vmem:[#allocation4 + $0x180] sm:$0xf] }
 0x11f   :  { %v3487_v46 = vor.u32 %v3857_v44, %v3486_v34  ;;  %v3875_v34 = vld [vmem:[%s4174_s5 + $0x18] sm:$0xff]  ;;  %v3874_v44 = vld [vmem:[%s4174_s5 + $0x10] sm:$0xff] }
 0x120   :  { %v1575_v13 = vadd.f32 %v1574_v47, %v1561_v1  ;;  %v3870_v47 = vld [vmem:[#allocation4 + $0x1f4] sm:$0xf]  ;;  %v3504_v1 = vld [vmem:[#allocation4 + $0x1a8] sm:$0xf0] }
 0x121   :  { %2180 = vmatpush.bf16.msra.mxu0 %v3503_v38  ;;  %v3878_v38 = vld [vmem:[%s4174_s5 + $0x30] sm:$0xff] }
 0x122   :  { %2220 = vmatpush.bf16.msrb.mxu2 %v3459_v45 }
 0x125   :  { %2181 = vmatpush.bf16.msra.mxu0 %v3495_v43  ;;  %v3887_v43 = vld [vmem:[%s4174_s5 + $0x78] sm:$0xff] }
 0x126   :  { %2221 = vmatpush.bf16.msrb.mxu2 %v3451_v53  ;;  %v1628_v5 = vpop.f32.mrf.mxu0  ;;  %v3866_v53 = vld [vmem:[#allocation4 + $0x1d4] sm:$0xf]  ;;  %2397 = vmatpush.bf16.msra.mxu1 %v3887_v43 }
 0x127   :  { %v1586_v40 = vpop.f32.mrf.mxu2  ;;  %v3531_v55 = vor.u32 %v3866_v53, %v3528_v54  ;;  %v1807_v53 = vld [vmem:[%s4173_s4] sm:$0x3]  ;;  %v3881_v54 = vld [vmem:[%s4174_s5 + $0x48] sm:$0xff] }
 0x128   :  { %2211 = vmatmul.bf16.vlgmr.msrb.gmra.mxu1 %v1740_v22  ;;  %v1587_v10 = vadd.f32 %v1586_v40, %v1573_v0  ;;  %v3544_v40 = vld [vmem:[#allocation4 + $0x1f8] sm:$0xf0]  ;;  %v3860_v0 = vld [vmem:[#allocation4 + $0x1a4] sm:$0xf] }
 0x129   :  { %2182 = vmatpush.bf16.msra.mxu0 %v3487_v46  ;;  %v3547_v48 = vor.u32 %v3870_v47, %v3544_v40  ;;  %v3873_v46 = vld [vmem:[%s4174_s5 + $0x8] sm:$0xff]  ;;  %v3872_v40 = vld [vmem:[%s4174_s5] sm:$0xff] }
 0x12a   :  { %2222 = vmatpush.bf16.msrb.mxu2 %v3443_v60  ;;  %v3885_v47 = vld [vmem:[%s4174_s5 + $0x68] sm:$0xff] }
 0x12d   :  { %2231 = vmatpush.bf16.msrb.mxu0 %v3547_v48  ;;  %v3884_v48 = vld [vmem:[%s4174_s5 + $0x60] sm:$0xff] }
 0x12e   :  { %2223 = vmatpush.bf16.msrb.mxu2 %v3435_v4  ;;  %v1630_v27 = vpop.f32.mrf.mxu0  ;;  %v3507_v4 = vor.u32 %v3860_v0, %v3504_v1 }
 0x12f   :  { %v1600_v35 = vpop.f32.mrf.mxu1  ;;  %v1588_v17 = vpop.f32.mrf.mxu2 }
 0x130   :  { %v1601_v15 = vadd.f32 %v1600_v35, %v1587_v10  ;;  %v1589_v12 = vadd.f32 %v1588_v17, %v1575_v13  ;;  %v3520_v35 = vld [vmem:[#allocation4 + $0x1c8] sm:$0xf0] }
 0x131   :  { %2232 = vmatpush.bf16.msrb.mxu0 %v3539_v51  ;;  %v3523_v57 = vor.u32 %v3864_v56, %v3520_v35  ;;  %v3880_v56 = vld [vmem:[%s4174_s5 + $0x40] sm:$0xff] }
 0x132   :  { %2224 = vmatpush.bf16.msrb.mxu2 %v3427_v16 }
 0x135   :  { %v1614_v6 = vpop.f32.mrf.mxu3  ;;  %2233 = vmatpush.bf16.msrb.mxu0 %v3531_v55  ;;  %v1809_v55 = vperm.slane %v1807_v53, 0 }
 0x136   :  { %v1615_v21 = vadd.f32 %v1614_v6, %v1601_v15  ;;  %v3858_v6 = vld [vmem:[#allocation4 + $0x194] sm:$0xf] }
 0x137   :  { %v1602_v18 = vpop.f32.mrf.mxu1  ;;  %v3499_v10 = vor.u32 %v3858_v6, %v3496_v7 }
 0x138   :  { %v1603_v22 = vadd.f32 %v1602_v18, %v1589_v12  ;;  %v1629_v24 = vadd.f32 %v1628_v5, %v1615_v21 }
 0x139   :  { %2234 = vmatpush.bf16.msrb.mxu0 %v3523_v57 }
 0x13a   :  { %v1733_v28 = vmax.f32 %v1629_v24, 0.0  ;;  %v1656_v41 = vpop.f32.mrf.mxu0 }
 0x13d   :  { %v1616_v23 = vpop.f32.mrf.mxu3  ;;  %2235 = vmatpush.bf16.msrb.mxu0 %v3515_v62 }
 0x13e   :  { %v1617_v25 = vadd.f32 %v1616_v23, %v1603_v22 }
 0x140   :  { %v1631_v26 = vadd.f32 %v1630_v27, %v1617_v25 }
 0x141   :  { %2236 = vmatpush.bf16.msrb.mxu0 %v3507_v4 }
 0x142   :  { %v1737_v29 = vmax.f32 %v1631_v26, 0.0  ;;  %v1658_v2 = vpop.f32.mrf.mxu0 }
 0x144   :  { %v1741_v37 = vpack.c.bf16 %v1737_v29, %v1733_v28 }
 0x145   :  { %2237 = vmatpush.bf16.msrb.mxu0 %v3499_v10  ;;  %v1810_v10 = vperm.slane %v1807_v53, 1 }
 0x146   :  { %2169 = vmatmul.bf16.vlgmr.msra.gmra.mxu2 %v1741_v37 }
 0x147   :  { %v1642_v45 = vpop.f32.mrf.mxu2 }
 0x148   :  { %v1643_v5 = vadd.f32 %v1642_v45, %v350_v11  ;;  %v3886_v45 = vld [vmem:[%s4174_s5 + $0x70] sm:$0xff] }
 0x149   :  { %2238 = vmatpush.bf16.msrb.mxu0 %v3491_v19  ;;  %2398 = vmatpush.bf16.msra.mxu1 %v3886_v45 }
 0x14a   :  { %v1657_v13 = vadd.f32 %v1656_v41, %v1643_v5  ;;  %v3882_v41 = vld [vmem:[%s4174_s5 + $0x50] sm:$0xff] }
 0x14d   :  { %2399 = vmatpush.bf16.msra.mxu1 %v3885_v47 }
 0x14f   :  { %v1644_v52 = vpop.f32.mrf.mxu2  ;;  %v1670_v60 = vpop.f32.mrf.mxu1 }
 0x150   :  { %v1645_v8 = vadd.f32 %v1644_v52, %v350_v11  ;;  %v1671_v20 = vadd.f32 %v1670_v60, %v1657_v13 }
 0x151   :  { %2400 = vmatpush.bf16.msra.mxu1 %v3884_v48 }
 0x152   :  { %v1659_v16 = vadd.f32 %v1658_v2, %v1645_v8 }
 0x155   :  { %v1684_v3 = vpop.f32.mrf.mxu3  ;;  %2401 = vmatpush.bf16.msra.mxu1 %v3883_v49 }
 0x156   :  { %2225 = vmatmul.bf16.vlgmr.msrb.gmra.mxu2 %v1741_v37  ;;  %v1685_v12 = vadd.f32 %v1684_v3, %v1671_v20  ;;  %v3879_v37 = vld [vmem:[%s4174_s5 + $0x38] sm:$0xff] }
 0x157   :  { %v1672_v17 = vpop.f32.mrf.mxu1  ;;  %2383 = vmatpush.bf16.msra.mxu3 %v3879_v37 }
 0x158   :  { %v1712_v15 = vpop.f32.mrf.mxu0  ;;  %v1673_v21 = vadd.f32 %v1672_v17, %v1659_v16 }
 0x159   :  { %2402 = vmatpush.bf16.msra.mxu1 %v3882_v41 }
 0x15b   :  { %2384 = vmatpush.bf16.msra.mxu3 %v3878_v38 }
 0x15d   :  { %v1686_v18 = vpop.f32.mrf.mxu3  ;;  %2403 = vmatpush.bf16.msra.mxu1 %v3881_v54 }
 0x15e   :  { %v1687_v22 = vadd.f32 %v1686_v18, %v1673_v21 }
 0x15f   :  { %2385 = vmatpush.bf16.msra.mxu3 %v3877_v39 }
 0x160   :  { %v1714_v27 = vpop.f32.mrf.mxu0 }
 0x161   :  { %2404 = vmatpush.bf16.msra.mxu1 %v3880_v56 }
 0x163   :  { %2386 = vmatpush.bf16.msra.mxu3 %v3876_v42 }
 0x167   :  { %v1698_v61 = vpop.f32.mrf.mxu2  ;;  %2387 = vmatpush.bf16.msra.mxu3 %v3875_v34 }
 0x168   :  { %v1699_v24 = vadd.f32 %v1698_v61, %v1685_v12 }
 0x16a   :  { %v1713_v26 = vadd.f32 %v1712_v15, %v1699_v24 }
 0x16b   :  { %2388 = vmatpush.bf16.msra.mxu3 %v3874_v44 }
 0x16f   :  { %v1700_v9 = vpop.f32.mrf.mxu2  ;;  %2389 = vmatpush.bf16.msra.mxu3 %v3873_v46 }
 0x170   :  { %v1701_v25 = vadd.f32 %v1700_v9, %v1687_v22 }
 0x172   :  { %v1715_v28 = vadd.f32 %v1714_v27, %v1701_v25 }
 0x173   :  { %2390 = vmatpush.bf16.msra.mxu3 %v3872_v40 }
 0x175   :  { %v2142_v50 = vpop.f32.mrf.mxu3 }
 0x176   :  { %v2143_v60 = vadd.f32 %v2142_v50, %v1809_v55 }
 0x177   :  { %v1726_v23 = vpop.f32.mrf.mxu2 }
 0x178   :  { %v1727_v29 = vadd.f32 %v1726_v23, %v1713_v26 }
 0x17a   :  { %v1734_v32 = vmax.f32 %v1727_v29, 0.0  ;;  %v3894_v29 = vld [vmem:[%s4175_s6] ss:$0 sm:$0xff] }
 0x17d   :  { %v2144_v35 = vpop.f32.mrf.mxu3 }
 0x17e   :  { %v2145_v61 = vadd.f32 %v2144_v35, %v1809_v55 }
 0x17f   :  { %v1728_v30 = vpop.f32.mrf.mxu2 }
 0x180   :  { %v1729_v31 = vadd.f32 %v1728_v30, %v1715_v28 }
 0x182   :  { %v1738_v33 = vmax.f32 %v1729_v31, 0.0 }
 0x184   :  { %v1742_v36 = vpack.c.bf16 %v1738_v33, %v1734_v32 }
 0x186   :  { %2183 = vmatmul.bf16.vlgmr.msra.gmra.mxu0 %v1742_v36 }
 0x195   :  { %v2156_v51 = vpop.f32.mrf.mxu1  ;;  %v2198_v1 = vpop.f32.mrf.mxu3 }
 0x196   :  { %2239 = vmatmul.bf16.vlgmr.msrb.gmra.mxu0 %v1742_v36  ;;  %v2157_v62 = vadd.f32 %v2156_v51, %v2143_v60  ;;  %v2199_v17 = vadd.f32 %v2198_v1, %v1810_v10 }
 0x19d   :  { %v2158_v57 = vpop.f32.mrf.mxu1  ;;  %v2200_v63 = vpop.f32.mrf.mxu3 }
 0x19e   :  { %v2159_v11 = vadd.f32 %v2158_v57, %v2145_v61  ;;  %v2201_v16 = vadd.f32 %v2200_v63, %v1810_v10 }
 0x1a5   :  { %v2212_v4 = vpop.f32.mrf.mxu1 }
 0x1a6   :  { %v2213_v20 = vadd.f32 %v2212_v4, %v2199_v17 }
 0x1ad   :  { %v2214_v15 = vpop.f32.mrf.mxu1 }
 0x1ae   :  { %v2215_v19 = vadd.f32 %v2214_v15, %v2201_v16 }
 0x1c9   :  { %v2170_v52 = vpop.f32.mrf.mxu2 }
 0x1ca   :  { %v2171_v0 = vadd.f32 %v2170_v52, %v2157_v62 }
 0x1d1   :  { %v2172_v58 = vpop.f32.mrf.mxu2 }
 0x1d2   :  { %v2173_v2 = vadd.f32 %v2172_v58, %v2159_v11 }
 0x1d9   :  { %v2226_v7 = vpop.f32.mrf.mxu2 }
 0x1da   :  { %v2227_v12 = vadd.f32 %v2226_v7, %v2213_v20 }
 0x1e1   :  { %v2228_v18 = vpop.f32.mrf.mxu2 }
 0x1e2   :  { %v2229_v21 = vadd.f32 %v2228_v18, %v2215_v19 }
 0x203   :  { %v2184_v59 = vpop.f32.mrf.mxu0 }
 0x204   :  { %v2185_v3 = vadd.f32 %v2184_v59, %v2171_v0 }
 0x206   :  { %v2245_v8 = vmax.f32 %v2185_v3, 0.0 }
 0x20b   :  { %v2186_v5 = vpop.f32.mrf.mxu0 }
 0x20c   :  { %v2187_v6 = vadd.f32 %v2186_v5, %v2173_v2 }
 0x20e   :  { %v2247_v9 = vmax.f32 %v2187_v6, 0.0 }
 0x210   :  { %v2249_v13 = vpack.c.bf16 %v2247_v9, %v2245_v8 }
 0x212   :  { %2391 = vmatmul.bf16.vlgmr.msra.gmra.mxu3 %v2249_v13 }
 0x213   :  { %v2240_v14 = vpop.f32.mrf.mxu0 }
 0x214   :  { %v2241_v22 = vadd.f32 %v2240_v14, %v2227_v12 }
 0x216   :  { %v2246_v25 = vmax.f32 %v2241_v22, 0.0 }
 0x21b   :  { %v2242_v23 = vpop.f32.mrf.mxu0 }
 0x21c   :  { %v2243_v24 = vadd.f32 %v2242_v23, %v2229_v21 }
 0x21e   :  { %v2248_v27 = vmax.f32 %v2243_v24, 0.0 }
 0x220   :  { %v2250_v26 = vpack.c.bf16 %v2248_v27, %v2246_v25 }
 0x222   :  { %2405 = vmatmul.bf16.vlgmr.msra.gmra.mxu1 %v2250_v26 }
 0x295   :  { %v2392_v28 = vpop.f32.mrf.mxu3 }
 0x296   :  { %v2393_v30 = vadd.f32 %v3894_v29, %v2392_v28 }
 0x29d   :  { %v2394_v33 = vpop.f32.mrf.mxu3 }
 0x29f   :  { %v2406_v31 = vpop.f32.mrf.mxu1 }
 0x2a0   :  { %v2407_v32 = vadd.f32 %v2406_v31, %v2393_v30 }
 0x2a2   :  { %v2411_v36 = vpack.c.bf16 %v2407_v32, %v2407_v32 }
 0x2a4   :  { %v2415_v37 = vrot.slane %v2411_v36, 3 }
 0x2a6   :  { %v2420_v38 = vsel %vm2417_vm1, %v2411_v36, %v2415_v37 }
 0x2a7   :  { %2453 = vst [vmem:[#allocation6] sm:$0x1] %v2420_v38  ;;  %v2408_v39 = vpop.f32.mrf.mxu1 }
 0x2ae   :  { %v2479_v42 = vld [vmem:[#allocation6] sm:$0x1] }
 0x2af   :  { %2480 = vst [vmem:[%s4176_s7] sm:$0x1] %v2479_v42 }
 0x2b0   :  { %2498 = vsyncpa [#allocation3], 1 }
 0x2b1   :  { %2499 = vsyncpa [#allocation5], 1 }

</bundles_post_ra>
